<compile_context>
chip_gen: v5e
topology: v5e:2x2
jax: 0.10.0
libtpu: 0.0.40
codegen_flags: <defaults>
</compile_context>

<pallas_src>
import functools
from math import ceil

import numpy as np
import jax
import jax.numpy as jnp
from jax import lax
from jax.experimental import pallas as pl
from jax.experimental.pallas import tpu as pltpu


# =============================================================================
# In-kernel building blocks
# =============================================================================
def _groupnorm_elu(y, gmask_ref, gamma_ref, beta_ref, *, num_groups, count):
    """GroupNorm (eps=1e-5, biased var) + ELU over a lane-major (H, W*C) tile.

    Per-group statistics are VPU masked sums with a precomputed (G, W*C)
    0/1 lane mask; variance is computed as E[(x-mean)^2].
    """
    inv_cnt = 1.0 / float(count)
    if num_groups == 1:
        mean = jnp.sum(y, keepdims=True) * inv_cnt                  # (1, 1)
        d = y - mean
        var = jnp.sum(d * d, keepdims=True) * inv_cnt
        rstd_lane = lax.rsqrt(var + 1e-5)                           # (1, 1)
    else:
        gm = gmask_ref[...]                                         # (G, NC) f32
        mean_lane = jnp.zeros((1, y.shape[1]), jnp.float32)
        for g in range(num_groups):
            mg = gm[g:g + 1, :]                                     # (1, NC)
            s = jnp.sum(y * mg, keepdims=True) * inv_cnt
            mean_lane = mean_lane + s * mg
        d = y - mean_lane
        rstd_lane = jnp.zeros((1, y.shape[1]), jnp.float32)
        for g in range(num_groups):
            mg = gm[g:g + 1, :]
            v = jnp.sum((d * d) * mg, keepdims=True) * inv_cnt
            rstd_lane = rstd_lane + lax.rsqrt(v + 1e-5) * mg
    yn = d * (rstd_lane * gamma_ref[...]) + beta_ref[...]
    # ELU (alpha = 1)
    return jnp.where(yn > 0, yn, jnp.exp(jnp.minimum(yn, 0.0)) - 1.0)


def _conv3x3_s1(pad_ref, x, b_ref, *, H):
    """3x3 conv, stride 1, padding 1, as 3 accumulating MXU dots.

    x: (H, W*Cin) f32 in registers.  b_ref: (3, W*Cin, W*Cout) bf16.
    pad_ref: (H+2, W*Cin) f32 scratch; only the 2 border rows are zeroed.
    """
    wc = x.shape[1]
    zero_row = jnp.zeros((1, wc), jnp.float32)
    pad_ref[0:1, :] = zero_row                   # top border (input row -1)
    pad_ref[H + 1:H + 2, :] = zero_row           # bottom border (input row H)
    pad_ref[1:1 + H, :] = x                      # interior rows
    y = jnp.dot(pad_ref[0:H, :].astype(jnp.bfloat16), b_ref[0],
                preferred_element_type=jnp.float32)                 # rows h-1
    y = y + jnp.dot(x.astype(jnp.bfloat16), b_ref[1],
                    preferred_element_type=jnp.float32)             # rows h
    y = y + jnp.dot(pad_ref[2:2 + H, :].astype(jnp.bfloat16), b_ref[2],
                    preferred_element_type=jnp.float32)             # rows h+1
    return y


def _conv3x3_s2(pad_ref, z, b_ref, *, H, H2):
    """3x3 conv, stride 2, padding 1, as 3 accumulating MXU dots.

    Stride-2 row subselection is done with stride-2 `pl.ds` reads from the
    padded scratch (row 0 is still zero from the stride-1 conv of this stage).
    """
    pad_ref[1:1 + H, :] = z                      # overwrite interior rows
    y = jnp.dot(pad_ref[pl.ds(0, H2, stride=2), :].astype(jnp.bfloat16), b_ref[0],
                preferred_element_type=jnp.float32)                 # rows 2j-1
    y = y + jnp.dot(pad_ref[pl.ds(1, H2, stride=2), :].astype(jnp.bfloat16), b_ref[1],
                    preferred_element_type=jnp.float32)             # rows 2j
    y = y + jnp.dot(pad_ref[pl.ds(2, H2, stride=2), :].astype(jnp.bfloat16), b_ref[2],
                    preferred_element_type=jnp.float32)             # rows 2j+1
    return y


# =============================================================================
# Fused whole-encoder kernel (one grid step == one image through the encoder)
# =============================================================================
def _encoder_kernel(*refs, stage_meta):
    ns = len(stage_meta)
    x_ref = refs[0]
    w_refs = refs[1:1 + 8 * ns]
    wh_ref = refs[1 + 8 * ns]
    bh_ref = refs[2 + 8 * ns]
    out_ref = refs[3 + 8 * ns]
    pad_refs = refs[4 + 8 * ns:]

    x = x_ref[0]                                                    # (H0, W0*C0) f32
    for si, (H, W, Cin, Cout, H2, W2, G1, G2) in enumerate(stage_meta):
        b1, g1, be1, m1, b2, g2, be2, m2 = w_refs[8 * si:8 * (si + 1)]
        pad = pad_refs[si]

        # conv1: stride-1 ConvBlock (Cin -> Cin), then residual add (out + x)
        y1 = _conv3x3_s1(pad, x, b1, H=H)
        y1 = _groupnorm_elu(y1, m1, g1, be1, num_groups=G1,
                            count=H * W * (Cin // G1))
        z = y1 + x

        # conv2: stride-2 ConvBlock (Cin -> Cout), downsample
        y2 = _conv3x3_s2(pad, z, b2, H=H, H2=H2)
        x = _groupnorm_elu(y2, m2, g2, be2, num_groups=G2,
                           count=H2 * W2 * (Cout // G2))

    # Fused fc_mu / fc_logvar head: Hf accumulating (1, WC) @ (WC, 2L) dots.
    # (Head weight rows were permuted at prep time so the row-major (h, w, c)
    # order here matches torch's NCHW flatten -- no transpose, no lane concat.)
    Hf = x.shape[0]
    acc = bh_ref[...]                                               # (1, 2L) f32
    for h in range(Hf):
        acc = acc + jnp.dot(x[h:h + 1, :].astype(jnp.bfloat16), wh_ref[h],
                            preferred_element_type=jnp.float32)
    out_ref[0] = acc                                                # (1, 2L)


# =============================================================================
# Wrapper-side weight preparation (done once, off the critical path)
# =============================================================================
def make_banded_conv_weights(w, w_in, stride, w_out):
    """Fold a (3,3,Cin,Cout) HWIO conv weight (padding=1, given width stride)
    into a (3, w_in*Cin, w_out*Cout) stack of banded matrices -- one per
    vertical tap -- acting on (W*Cin)-lane row-major activations."""
    _, _, cin, cout = w.shape
    b = np.zeros((3, w_in, cin, w_out, cout), np.float32)
    for kh in range(3):
        for kw in range(3):
            for j in range(w_out):
                wi = stride * j - 1 + kw
                if 0 <= wi < w_in:
                    b[kh, wi, :, j, :] += w[kh, kw, :, :]
    return b.reshape(3, w_in * cin, w_out * cout)


def make_group_mask(channels, width, groups):
    """(G, width*channels) 0/1 mask: mask[g, w*C + c] = 1 iff c//(C//G) == g."""
    cg = channels // groups
    lane_c = np.tile(np.arange(channels), width)
    m = np.zeros((groups, width * channels), np.float32)
    for g in range(groups):
        m[g, (lane_c // cg) == g] = 1.0
    return m


def prepare_kernel_params(params, img_size, in_channels, hidden_layers, latent_dim):
    H, W = img_size
    c = in_channels
    stages, meta = [], []
    for li, layer in enumerate(hidden_layers):
        p = params["blocks"][li]
        H2 = (H - 1) // 2 + 1
        W2 = (W - 1) // 2 + 1
        g1 = min(32, max(1, c // 4))
        g2 = min(32, max(1, layer // 4))
        w1 = np.asarray(p["w1"], np.float32)
        w2 = np.asarray(p["w2"], np.float32)
        stages.append(dict(
            b1=jnp.asarray(make_banded_conv_weights(w1, W, 1, W), jnp.bfloat16),
            g1=jnp.asarray(np.tile(np.asarray(p["g1"], np.float32).reshape(1, c), (1, W))),
            be1=jnp.asarray(np.tile(np.asarray(p["b1"], np.float32).reshape(1, c), (1, W))),
            m1=jnp.asarray(make_group_mask(c, W, g1)),
            b2=jnp.asarray(make_banded_conv_weights(w2, W, 2, W2), jnp.bfloat16),
            g2=jnp.asarray(np.tile(np.asarray(p["g2"], np.float32).reshape(1, layer), (1, W2))),
            be2=jnp.asarray(np.tile(np.asarray(p["b2"], np.float32).reshape(1, layer), (1, W2))),
            m2=jnp.asarray(make_group_mask(layer, W2, g2)),
        ))
        meta.append((H, W, c, layer, H2, W2, g1, g2))
        H, W, c = H2, W2, layer

    # Fuse fc_mu / fc_logvar; permute rows from NCHW-flatten to (h, w, c) order
    # and reshape to (Hf, Wf*Cf, 2L) for the per-row accumulating head dots.
    Hf, Wf, Cf = H, W, c
    D = Hf * Wf * Cf
    perm = np.empty(D, np.int64)
    for hh in range(Hf):
        for ww in range(Wf):
            for cc in range(Cf):
                perm[hh * Wf * Cf + ww * Cf + cc] = cc * Hf * Wf + hh * Wf + ww
    wmu = np.asarray(params["wmu"], np.float32)[perm]
    wlv = np.asarray(params["wlv"], np.float32)[perm]
    wh = np.concatenate([wmu, wlv], axis=1).reshape(Hf, Wf * Cf, 2 * latent_dim)
    bh = np.concatenate([np.asarray(params["bmu"], np.float32).reshape(1, -1),
                         np.asarray(params["blv"], np.float32).reshape(1, -1)], axis=1)
    return dict(stages=stages, meta=tuple(meta), latent_dim=latent_dim,
                wh=jnp.asarray(wh, jnp.bfloat16), bh=jnp.asarray(bh, jnp.float32))


def _full_block_spec(a):
    nd = a.ndim
    return pl.BlockSpec(a.shape, lambda n, _nd=nd: (0,) * _nd)


def encoder_forward(x_nchw, kparams):
    meta = kparams["meta"]
    L = kparams["latent_dim"]
    N, C, H, W = x_nchw.shape
    # NCHW -> row-major (H, W*C) per sample (one cheap boundary transform).
    x2d = jnp.transpose(x_nchw, (0, 2, 3, 1)).reshape(N, H, W * C)

    inputs = [x2d]
    in_specs = [pl.BlockSpec((1, H, W * C), lambda n: (n, 0, 0))]
    for st in kparams["stages"]:
        for name in ("b1", "g1", "be1", "m1", "b2", "g2", "be2", "m2"):
            a = st[name]
            inputs.append(a)
            in_specs.append(_full_block_spec(a))
    for a in (kparams["wh"], kparams["bh"]):
        inputs.append(a)
        in_specs.append(_full_block_spec(a))

    # Single lane-merged output: (mu | logvar) per sample.
    out_shape = jax.ShapeDtypeStruct((N, 1, 2 * L), jnp.float32)
    out_specs = pl.BlockSpec((1, 1, 2 * L), lambda n: (n, 0, 0))

    # One small (H+2, W*Cin) padded-rows scratch per stage, shared by both
    # convs of the stage (border rows zeroed in-kernel).
    scratch_shapes = [pltpu.VMEM((h + 2, w * cin), jnp.float32)
                      for (h, w, cin, _co, _h2, _w2, _g1, _g2) in meta]

    kernel = functools.partial(_encoder_kernel, stage_meta=meta)
    out = pl.pallas_call(
        kernel,
        out_shape=out_shape,
        grid=(N,),
        in_specs=in_specs,
        out_specs=out_specs,
        scratch_shapes=scratch_shapes,
        compiler_params=pltpu.CompilerParams(dimension_semantics=("parallel",)),
    )(*inputs)
    mu_lv = out[:, 0, :]
    return mu_lv[:, :L], mu_lv[:, L:]


# =============================================================================
# Pure-JAX reference (f32) for a correctness check
# =============================================================================
def encoder_reference(x_nchw, params):
    def elu(v):
        return jnp.where(v > 0, v, jnp.exp(jnp.minimum(v, 0.0)) - 1.0)

    def conv_block(h, w, gamma, beta, stride):
        y = lax.conv_general_dilated(h, w, (stride, stride), ((1, 1), (1, 1)),
                                     dimension_numbers=("NHWC", "HWIO", "NHWC"))
        n, hh, ww, cc = y.shape
        g = min(32, max(1, cc // 4))
        yg = y.reshape(n, hh, ww, g, cc // g)
        m = yg.mean(axis=(1, 2, 4), keepdims=True)
        v = ((yg - m) ** 2).mean(axis=(1, 2, 4), keepdims=True)
        yn = ((yg - m) / jnp.sqrt(v + 1e-5)).reshape(n, hh, ww, cc)
        yn = yn * gamma.reshape(1, 1, 1, cc) + beta.reshape(1, 1, 1, cc)
        return elu(yn)

    x = jnp.transpose(x_nchw, (0, 2, 3, 1))
    for p in params["blocks"]:
        out = conv_block(x, p["w1"], p["g1"], p["b1"], 1)
        x = conv_block(out + x, p["w2"], p["g2"], p["b2"], 2)
    flat = jnp.transpose(x, (0, 3, 1, 2)).reshape(x.shape[0], -1)
    mu = flat @ params["wmu"] + params["bmu"].reshape(1, -1)
    lv = flat @ params["wlv"] + params["blv"].reshape(1, -1)
    return mu, lv


# =============================================================================
# Deterministic synthetic parameters (shapes per the module's __init__)
# =============================================================================
def init_params(key, in_channels, hidden_layers, enc_dim, latent_dim):
    blocks = []
    c = in_channels
    for layer in hidden_layers:
        key, k1, k2, k3, k4, k5, k6 = jax.random.split(key, 7)
        blocks.append({
            "w1": jax.random.normal(k1, (3, 3, c, c), jnp.float32) * (2.0 / (9 * c)) ** 0.5,
            "g1": 1.0 + 0.1 * jax.random.normal(k3, (c,), jnp.float32),
            "b1": 0.1 * jax.random.normal(k4, (c,), jnp.float32),
            "w2": jax.random.normal(k2, (3, 3, c, layer), jnp.float32) * (2.0 / (9 * c)) ** 0.5,
            "g2": 1.0 + 0.1 * jax.random.normal(k5, (layer,), jnp.float32),
            "b2": 0.1 * jax.random.normal(k6, (layer,), jnp.float32),
        })
        c = layer
    key, kmu, klv, kbm, kbl = jax.random.split(key, 5)
    s = 1.0 / enc_dim ** 0.5
    return {
        "blocks": blocks,
        "wmu": jax.random.uniform(kmu, (enc_dim, latent_dim), jnp.float32, -s, s),
        "bmu": jax.random.uniform(kbm, (latent_dim,), jnp.float32, -s, s),
        "wlv": jax.random.uniform(klv, (enc_dim, latent_dim), jnp.float32, -s, s),
        "blv": jax.random.uniform(kbl, (latent_dim,), jnp.float32, -s, s),
    }


if __name__ == "__main__":
    # Small shapes consistent with the module: Encoder((16,16), 4, 8, (8,16))
    img_size = (16, 16)
    in_channels = 4
    latent_dim = 8
    hidden_layers = (8, 16)
    batch = 2

    origin_shape = (hidden_layers[-1],
                    ceil(img_size[0] / 2 ** len(hidden_layers)),
                    ceil(img_size[1] / 2 ** len(hidden_layers)))
    enc_dim = origin_shape[0] * origin_shape[1] * origin_shape[2]

    key = jax.random.PRNGKey(0)
    kx, kp = jax.random.split(key)
    x = jax.random.normal(kx, (batch, in_channels, *img_size), jnp.float32)  # NCHW
    params = init_params(kp, in_channels, hidden_layers, enc_dim, latent_dim)
    kparams = prepare_kernel_params(params, img_size, in_channels,
                                    hidden_layers, latent_dim)

    fwd = jax.jit(lambda xb: encoder_forward(xb, kparams))
    mu, logvar = fwd(x)
    jax.block_until_ready((mu, logvar))
    assert mu.shape == (batch, latent_dim)
    assert logvar.shape == (batch, latent_dim)

    # Correctness vs. a pure-JAX f32 reference (bf16 MXU operands -> ~1e-2 err).
    mu_ref, lv_ref = encoder_reference(x, params)
    mu_ref = np.asarray(mu_ref)
    lv_ref = np.asarray(lv_ref)
    assert np.allclose(np.asarray(mu), mu_ref, atol=5e-2, rtol=5e-2), \
        float(np.abs(np.asarray(mu) - mu_ref).max())
    assert np.allclose(np.asarray(logvar), lv_ref, atol=5e-2, rtol=5e-2), \
        float(np.abs(np.asarray(logvar) - lv_ref).max())

    print("KERNEL_OK")
</pallas_src>

<mosaic_0001>
module attributes {stable_mosaic.version = 11 : i64} {
  func.func @_encoder_kernel(%arg0: i32, %arg1: memref<1x16x64xf32, #tpu.memory_space<vmem>>, %arg2: memref<3x64x64xbf16, #tpu.memory_space<vmem>>, %arg3: memref<1x64xf32, #tpu.memory_space<vmem>>, %arg4: memref<1x64xf32, #tpu.memory_space<vmem>>, %arg5: memref<1x64xf32, #tpu.memory_space<vmem>>, %arg6: memref<3x64x64xbf16, #tpu.memory_space<vmem>>, %arg7: memref<1x64xf32, #tpu.memory_space<vmem>>, %arg8: memref<1x64xf32, #tpu.memory_space<vmem>>, %arg9: memref<2x64xf32, #tpu.memory_space<vmem>>, %arg10: memref<3x64x64xbf16, #tpu.memory_space<vmem>>, %arg11: memref<1x64xf32, #tpu.memory_space<vmem>>, %arg12: memref<1x64xf32, #tpu.memory_space<vmem>>, %arg13: memref<2x64xf32, #tpu.memory_space<vmem>>, %arg14: memref<3x64x64xbf16, #tpu.memory_space<vmem>>, %arg15: memref<1x64xf32, #tpu.memory_space<vmem>>, %arg16: memref<1x64xf32, #tpu.memory_space<vmem>>, %arg17: memref<4x64xf32, #tpu.memory_space<vmem>>, %arg18: memref<4x64x16xbf16, #tpu.memory_space<vmem>>, %arg19: memref<1x16xf32, #tpu.memory_space<vmem>>, %arg20: memref<1x1x16xf32, #tpu.memory_space<vmem>>, %arg21: memref<18x64xf32, #tpu.memory_space<vmem>>, %arg22: memref<10x64xf32, #tpu.memory_space<vmem>>) attributes {dimension_semantics = [#tpu.dimension_semantics<parallel>], iteration_bounds = array<i64: 2>, scalar_prefetch = 0 : i64, scratch_operands = 2 : i64, tpu.core_type = #tpu.core_type<tc>, window_params = [{transform_indices = @transform_0, window_bounds = array<i64: 1, 16, 64>}, {pipeline_mode = #tpu.pipeline_mode<synchronous>, transform_indices = @transform_1, window_bounds = array<i64: 3, 64, 64>}, {pipeline_mode = #tpu.pipeline_mode<synchronous>, transform_indices = @transform_2, window_bounds = array<i64: 1, 64>}, {pipeline_mode = #tpu.pipeline_mode<synchronous>, transform_indices = @transform_3, window_bounds = array<i64: 1, 64>}, {pipeline_mode = #tpu.pipeline_mode<synchronous>, transform_indices = @transform_4, window_bounds = array<i64: 1, 64>}, {pipeline_mode = #tpu.pipeline_mode<synchronous>, transform_indices = @transform_5, window_bounds = array<i64: 3, 64, 64>}, {pipeline_mode = #tpu.pipeline_mode<synchronous>, transform_indices = @transform_6, window_bounds = array<i64: 1, 64>}, {pipeline_mode = #tpu.pipeline_mode<synchronous>, transform_indices = @transform_7, window_bounds = array<i64: 1, 64>}, {pipeline_mode = #tpu.pipeline_mode<synchronous>, transform_indices = @transform_8, window_bounds = array<i64: 2, 64>}, {pipeline_mode = #tpu.pipeline_mode<synchronous>, transform_indices = @transform_9, window_bounds = array<i64: 3, 64, 64>}, {pipeline_mode = #tpu.pipeline_mode<synchronous>, transform_indices = @transform_10, window_bounds = array<i64: 1, 64>}, {pipeline_mode = #tpu.pipeline_mode<synchronous>, transform_indices = @transform_11, window_bounds = array<i64: 1, 64>}, {pipeline_mode = #tpu.pipeline_mode<synchronous>, transform_indices = @transform_12, window_bounds = array<i64: 2, 64>}, {pipeline_mode = #tpu.pipeline_mode<synchronous>, transform_indices = @transform_13, window_bounds = array<i64: 3, 64, 64>}, {pipeline_mode = #tpu.pipeline_mode<synchronous>, transform_indices = @transform_14, window_bounds = array<i64: 1, 64>}, {pipeline_mode = #tpu.pipeline_mode<synchronous>, transform_indices = @transform_15, window_bounds = array<i64: 1, 64>}, {pipeline_mode = #tpu.pipeline_mode<synchronous>, transform_indices = @transform_16, window_bounds = array<i64: 4, 64>}, {pipeline_mode = #tpu.pipeline_mode<synchronous>, transform_indices = @transform_17, window_bounds = array<i64: 4, 64, 16>}, {pipeline_mode = #tpu.pipeline_mode<synchronous>, transform_indices = @transform_18, window_bounds = array<i64: 1, 16>}, {transform_indices = @transform_19, window_bounds = array<i64: 1, 1, 16>}]} {
    %c0 = arith.constant 0 : index
    %c0_0 = arith.constant 0 : index
    %c0_1 = arith.constant 0 : index
    %0 = vector.load %arg1[%c0, %c0_0, %c0_1] : memref<1x16x64xf32, #tpu.memory_space<vmem>>, vector<1x16x64xf32>
    %1 = vector.shape_cast %0 : vector<1x16x64xf32> to vector<16x64xf32>
    %cst = arith.constant 0.000000e+00 : f32
    %2 = vector.broadcast %cst : f32 to vector<1x64xf32>
    %c0_2 = arith.constant 0 : index
    %c0_3 = arith.constant 0 : index
    %3 = vector.load %arg21[%c0_2, %c0_3] : memref<18x64xf32, #tpu.memory_space<vmem>>, vector<1x64xf32>
    tpu.vector_store %arg21[%c0_2, %c0_3], %2 {strides = array<i32>} : memref<18x64xf32, #tpu.memory_space<vmem>>, vector<1x64xf32>,
    %c17 = arith.constant 17 : index
    %c0_4 = arith.constant 0 : index
    %4 = vector.load %arg21[%c17, %c0_4] : memref<18x64xf32, #tpu.memory_space<vmem>>, vector<1x64xf32>
    tpu.vector_store %arg21[%c17, %c0_4], %2 {strides = array<i32>} : memref<18x64xf32, #tpu.memory_space<vmem>>, vector<1x64xf32>,
    %c1 = arith.constant 1 : index
    %c0_5 = arith.constant 0 : index
    %5 = vector.load %arg21[%c1, %c0_5] : memref<18x64xf32, #tpu.memory_space<vmem>>, vector<16x64xf32>
    tpu.vector_store %arg21[%c1, %c0_5], %1 {strides = array<i32>} : memref<18x64xf32, #tpu.memory_space<vmem>>, vector<16x64xf32>,
    %c0_6 = arith.constant 0 : index
    %c0_7 = arith.constant 0 : index
    %6 = vector.load %arg21[%c0_6, %c0_7] : memref<18x64xf32, #tpu.memory_space<vmem>>, vector<16x64xf32>
    %7 = arith.truncf %6 : vector<16x64xf32> to vector<16x64xbf16>
    %c0_8 = arith.constant 0 : index
    %c0_9 = arith.constant 0 : index
    %c0_10 = arith.constant 0 : index
    %8 = vector.load %arg2[%c0_8, %c0_9, %c0_10] : memref<3x64x64xbf16, #tpu.memory_space<vmem>>, vector<1x64x64xbf16>
    %9 = vector.shape_cast %8 : vector<1x64x64xbf16> to vector<64x64xbf16>
    %cst_11 = arith.constant dense<0.000000e+00> : vector<16x64xf32>
    %10 = tpu.matmul %7, %9, %cst_11 {dimension_numbers = #tpu.dot_dimension_numbers<[1], [0], [0], [1], [0, 0, 1, 1], [], []>} : vector<16x64xbf16>, vector<64x64xbf16>, vector<16x64xf32> -> vector<16x64xf32>
    %11 = arith.truncf %1 : vector<16x64xf32> to vector<16x64xbf16>
    %c1_12 = arith.constant 1 : index
    %c0_13 = arith.constant 0 : index
    %c0_14 = arith.constant 0 : index
    %12 = vector.load %arg2[%c1_12, %c0_13, %c0_14] : memref<3x64x64xbf16, #tpu.memory_space<vmem>>, vector<1x64x64xbf16>
    %13 = vector.shape_cast %12 : vector<1x64x64xbf16> to vector<64x64xbf16>
    %cst_15 = arith.constant dense<0.000000e+00> : vector<16x64xf32>
    %14 = tpu.matmul %11, %13, %cst_15 {dimension_numbers = #tpu.dot_dimension_numbers<[1], [0], [0], [1], [0, 0, 1, 1], [], []>} : vector<16x64xbf16>, vector<64x64xbf16>, vector<16x64xf32> -> vector<16x64xf32>
    %15 = arith.addf %10, %14 : vector<16x64xf32>
    %c2 = arith.constant 2 : index
    %c0_16 = arith.constant 0 : index
    %16 = vector.load %arg21[%c2, %c0_16] : memref<18x64xf32, #tpu.memory_space<vmem>>, vector<16x64xf32>
    %17 = arith.truncf %16 : vector<16x64xf32> to vector<16x64xbf16>
    %c2_17 = arith.constant 2 : index
    %c0_18 = arith.constant 0 : index
    %c0_19 = arith.constant 0 : index
    %18 = vector.load %arg2[%c2_17, %c0_18, %c0_19] : memref<3x64x64xbf16, #tpu.memory_space<vmem>>, vector<1x64x64xbf16>
    %19 = vector.shape_cast %18 : vector<1x64x64xbf16> to vector<64x64xbf16>
    %cst_20 = arith.constant dense<0.000000e+00> : vector<16x64xf32>
    %20 = tpu.matmul %17, %19, %cst_20 {dimension_numbers = #tpu.dot_dimension_numbers<[1], [0], [0], [1], [0, 0, 1, 1], [], []>} : vector<16x64xbf16>, vector<64x64xbf16>, vector<16x64xf32> -> vector<16x64xf32>
    %21 = arith.addf %15, %20 : vector<16x64xf32>
    %22 = vector.shape_cast %21 : vector<16x64xf32> to vector<1x16x64xf32>
    %cst_21 = arith.constant dense<0.000000e+00> : vector<1xf32>
    %23 = vector.multi_reduction <add>, %22, %cst_21 [1, 2] : vector<1x16x64xf32> to vector<1xf32>
    %24 = vector.shape_cast %23 : vector<1xf32> to vector<1x1x1xf32>
    %25 = vector.extract %24[0, 0, 0] : f32 from vector<1x1x1xf32>
    %26 = vector.broadcast %25 : f32 to vector<1x1xf32>
    %cst_22 = arith.constant 9.765625E-4 : f32
    %27 = vector.broadcast %cst_22 : f32 to vector<1x1xf32>
    %28 = arith.mulf %26, %27 : vector<1x1xf32>
    %29 = vector.broadcast %28 : vector<1x1xf32> to vector<16x64xf32>
    %30 = arith.subf %21, %29 : vector<16x64xf32>
    %31 = arith.mulf %30, %30 : vector<16x64xf32>
    %32 = vector.shape_cast %31 : vector<16x64xf32> to vector<1x16x64xf32>
    %cst_23 = arith.constant dense<0.000000e+00> : vector<1xf32>
    %33 = vector.multi_reduction <add>, %32, %cst_23 [1, 2] : vector<1x16x64xf32> to vector<1xf32>
    %34 = vector.shape_cast %33 : vector<1xf32> to vector<1x1x1xf32>
    %35 = vector.extract %34[0, 0, 0] : f32 from vector<1x1x1xf32>
    %36 = vector.broadcast %35 : f32 to vector<1x1xf32>
    %cst_24 = arith.constant 9.765625E-4 : f32
    %37 = vector.broadcast %cst_24 : f32 to vector<1x1xf32>
    %38 = arith.mulf %36, %37 : vector<1x1xf32>
    %cst_25 = arith.constant 9.99999974E-6 : f32
    %39 = vector.broadcast %cst_25 : f32 to vector<1x1xf32>
    %40 = arith.addf %38, %39 : vector<1x1xf32>
    %41 = math.rsqrt %40 : vector<1x1xf32>
    %c0_26 = arith.constant 0 : index
    %c0_27 = arith.constant 0 : index
    %42 = vector.load %arg3[%c0_26, %c0_27] : memref<1x64xf32, #tpu.memory_space<vmem>>, vector<1x64xf32>
    %43 = vector.broadcast %41 : vector<1x1xf32> to vector<1x64xf32>
    %44 = arith.mulf %43, %42 : vector<1x64xf32>
    %45 = vector.broadcast %44 : vector<1x64xf32> to vector<16x64xf32>
    %46 = arith.mulf %30, %45 : vector<16x64xf32>
    %c0_28 = arith.constant 0 : index
    %c0_29 = arith.constant 0 : index
    %47 = vector.load %arg4[%c0_28, %c0_29] : memref<1x64xf32, #tpu.memory_space<vmem>>, vector<1x64xf32>
    %48 = vector.broadcast %47 : vector<1x64xf32> to vector<16x64xf32>
    %49 = arith.addf %46, %48 : vector<16x64xf32>
    %cst_30 = arith.constant 0.000000e+00 : f32
    %50 = vector.broadcast %cst_30 : f32 to vector<16x64xf32>
    %51 = arith.cmpf ogt, %49, %50 : vector<16x64xf32>
    %cst_31 = arith.constant 0.000000e+00 : f32
    %52 = vector.broadcast %cst_31 : f32 to vector<16x64xf32>
    %53 = arith.minimumf %49, %52 : vector<16x64xf32>
    %54 = math.exp %53 : vector<16x64xf32>
    %cst_32 = arith.constant 1.000000e+00 : f32
    %55 = vector.broadcast %cst_32 : f32 to vector<16x64xf32>
    %56 = arith.subf %54, %55 : vector<16x64xf32>
    %57 = arith.select %51, %49, %56 : vector<16x64xi1>, vector<16x64xf32>
    %58 = arith.addf %57, %1 : vector<16x64xf32>
    %c1_33 = arith.constant 1 : index
    %c0_34 = arith.constant 0 : index
    %59 = vector.load %arg21[%c1_33, %c0_34] : memref<18x64xf32, #tpu.memory_space<vmem>>, vector<16x64xf32>
    tpu.vector_store %arg21[%c1_33, %c0_34], %58 {strides = array<i32>} : memref<18x64xf32, #tpu.memory_space<vmem>>, vector<16x64xf32>,
    %c0_35 = arith.constant 0 : index
    %c0_36 = arith.constant 0 : index
    %60 = tpu.strided_load %arg21[%c0_35, %c0_36] {strides = array<i32: 2, 1>} : memref<18x64xf32, #tpu.memory_space<vmem>>, vector<8x64xf32>
    %61 = arith.truncf %60 : vector<8x64xf32> to vector<8x64xbf16>
    %c0_37 = arith.constant 0 : index
    %c0_38 = arith.constant 0 : index
    %c0_39 = arith.constant 0 : index
    %62 = vector.load %arg6[%c0_37, %c0_38, %c0_39] : memref<3x64x64xbf16, #tpu.memory_space<vmem>>, vector<1x64x64xbf16>
    %63 = vector.shape_cast %62 : vector<1x64x64xbf16> to vector<64x64xbf16>
    %cst_40 = arith.constant dense<0.000000e+00> : vector<8x64xf32>
    %64 = tpu.matmul %61, %63, %cst_40 {dimension_numbers = #tpu.dot_dimension_numbers<[1], [0], [0], [1], [0, 0, 1, 1], [], []>} : vector<8x64xbf16>, vector<64x64xbf16>, vector<8x64xf32> -> vector<8x64xf32>
    %c1_41 = arith.constant 1 : index
    %c0_42 = arith.constant 0 : index
    %65 = tpu.strided_load %arg21[%c1_41, %c0_42] {strides = array<i32: 2, 1>} : memref<18x64xf32, #tpu.memory_space<vmem>>, vector<8x64xf32>
    %66 = arith.truncf %65 : vector<8x64xf32> to vector<8x64xbf16>
    %c1_43 = arith.constant 1 : index
    %c0_44 = arith.constant 0 : index
    %c0_45 = arith.constant 0 : index
    %67 = vector.load %arg6[%c1_43, %c0_44, %c0_45] : memref<3x64x64xbf16, #tpu.memory_space<vmem>>, vector<1x64x64xbf16>
    %68 = vector.shape_cast %67 : vector<1x64x64xbf16> to vector<64x64xbf16>
    %cst_46 = arith.constant dense<0.000000e+00> : vector<8x64xf32>
    %69 = tpu.matmul %66, %68, %cst_46 {dimension_numbers = #tpu.dot_dimension_numbers<[1], [0], [0], [1], [0, 0, 1, 1], [], []>} : vector<8x64xbf16>, vector<64x64xbf16>, vector<8x64xf32> -> vector<8x64xf32>
    %70 = arith.addf %64, %69 : vector<8x64xf32>
    %c2_47 = arith.constant 2 : index
    %c0_48 = arith.constant 0 : index
    %71 = tpu.strided_load %arg21[%c2_47, %c0_48] {strides = array<i32: 2, 1>} : memref<18x64xf32, #tpu.memory_space<vmem>>, vector<8x64xf32>
    %72 = arith.truncf %71 : vector<8x64xf32> to vector<8x64xbf16>
    %c2_49 = arith.constant 2 : index
    %c0_50 = arith.constant 0 : index
    %c0_51 = arith.constant 0 : index
    %73 = vector.load %arg6[%c2_49, %c0_50, %c0_51] : memref<3x64x64xbf16, #tpu.memory_space<vmem>>, vector<1x64x64xbf16>
    %74 = vector.shape_cast %73 : vector<1x64x64xbf16> to vector<64x64xbf16>
    %cst_52 = arith.constant dense<0.000000e+00> : vector<8x64xf32>
    %75 = tpu.matmul %72, %74, %cst_52 {dimension_numbers = #tpu.dot_dimension_numbers<[1], [0], [0], [1], [0, 0, 1, 1], [], []>} : vector<8x64xbf16>, vector<64x64xbf16>, vector<8x64xf32> -> vector<8x64xf32>
    %76 = arith.addf %70, %75 : vector<8x64xf32>
    %c0_53 = arith.constant 0 : index
    %c0_54 = arith.constant 0 : index
    %77 = vector.load %arg9[%c0_53, %c0_54] : memref<2x64xf32, #tpu.memory_space<vmem>>, vector<2x64xf32>
    %cst_55 = arith.constant 0.000000e+00 : f32
    %78 = vector.broadcast %cst_55 : f32 to vector<1x64xf32>
    %79 = vector.extract_strided_slice %77 {offsets = [0, 0], sizes = [1, 64], strides = [1, 1]} : vector<2x64xf32> to vector<1x64xf32>
    %80 = vector.broadcast %79 : vector<1x64xf32> to vector<8x64xf32>
    %81 = arith.mulf %76, %80 : vector<8x64xf32>
    %82 = vector.shape_cast %81 : vector<8x64xf32> to vector<1x8x64xf32>
    %cst_56 = arith.constant dense<0.000000e+00> : vector<1xf32>
    %83 = vector.multi_reduction <add>, %82, %cst_56 [1, 2] : vector<1x8x64xf32> to vector<1xf32>
    %84 = vector.shape_cast %83 : vector<1xf32> to vector<1x1x1xf32>
    %85 = vector.extract %84[0, 0, 0] : f32 from vector<1x1x1xf32>
    %86 = vector.broadcast %85 : f32 to vector<1x1xf32>
    %cst_57 = arith.constant 3.906250e-03 : f32
    %87 = vector.broadcast %cst_57 : f32 to vector<1x1xf32>
    %88 = arith.mulf %86, %87 : vector<1x1xf32>
    %89 = vector.broadcast %88 : vector<1x1xf32> to vector<1x64xf32>
    %90 = arith.mulf %89, %79 : vector<1x64xf32>
    %91 = arith.addf %78, %90 : vector<1x64xf32>
    %92 = vector.extract_strided_slice %77 {offsets = [1, 0], sizes = [1, 64], strides = [1, 1]} : vector<2x64xf32> to vector<1x64xf32>
    %93 = vector.broadcast %92 : vector<1x64xf32> to vector<8x64xf32>
    %94 = arith.mulf %76, %93 : vector<8x64xf32>
    %95 = vector.shape_cast %94 : vector<8x64xf32> to vector<1x8x64xf32>
    %cst_58 = arith.constant dense<0.000000e+00> : vector<1xf32>
    %96 = vector.multi_reduction <add>, %95, %cst_58 [1, 2] : vector<1x8x64xf32> to vector<1xf32>
    %97 = vector.shape_cast %96 : vector<1xf32> to vector<1x1x1xf32>
    %98 = vector.extract %97[0, 0, 0] : f32 from vector<1x1x1xf32>
    %99 = vector.broadcast %98 : f32 to vector<1x1xf32>
    %cst_59 = arith.constant 3.906250e-03 : f32
    %100 = vector.broadcast %cst_59 : f32 to vector<1x1xf32>
    %101 = arith.mulf %99, %100 : vector<1x1xf32>
    %102 = vector.broadcast %101 : vector<1x1xf32> to vector<1x64xf32>
    %103 = arith.mulf %102, %92 : vector<1x64xf32>
    %104 = arith.addf %91, %103 : vector<1x64xf32>
    %105 = vector.broadcast %104 : vector<1x64xf32> to vector<8x64xf32>
    %106 = arith.subf %76, %105 : vector<8x64xf32>
    %cst_60 = arith.constant 0.000000e+00 : f32
    %107 = vector.broadcast %cst_60 : f32 to vector<1x64xf32>
    %108 = vector.extract_strided_slice %77 {offsets = [0, 0], sizes = [1, 64], strides = [1, 1]} : vector<2x64xf32> to vector<1x64xf32>
    %109 = arith.mulf %106, %106 : vector<8x64xf32>
    %110 = vector.broadcast %108 : vector<1x64xf32> to vector<8x64xf32>
    %111 = arith.mulf %109, %110 : vector<8x64xf32>
    %112 = vector.shape_cast %111 : vector<8x64xf32> to vector<1x8x64xf32>
    %cst_61 = arith.constant dense<0.000000e+00> : vector<1xf32>
    %113 = vector.multi_reduction <add>, %112, %cst_61 [1, 2] : vector<1x8x64xf32> to vector<1xf32>
    %114 = vector.shape_cast %113 : vector<1xf32> to vector<1x1x1xf32>
    %115 = vector.extract %114[0, 0, 0] : f32 from vector<1x1x1xf32>
    %116 = vector.broadcast %115 : f32 to vector<1x1xf32>
    %cst_62 = arith.constant 3.906250e-03 : f32
    %117 = vector.broadcast %cst_62 : f32 to vector<1x1xf32>
    %118 = arith.mulf %116, %117 : vector<1x1xf32>
    %cst_63 = arith.constant 9.99999974E-6 : f32
    %119 = vector.broadcast %cst_63 : f32 to vector<1x1xf32>
    %120 = arith.addf %118, %119 : vector<1x1xf32>
    %121 = math.rsqrt %120 : vector<1x1xf32>
    %122 = vector.broadcast %121 : vector<1x1xf32> to vector<1x64xf32>
    %123 = arith.mulf %122, %108 : vector<1x64xf32>
    %124 = arith.addf %107, %123 : vector<1x64xf32>
    %125 = vector.extract_strided_slice %77 {offsets = [1, 0], sizes = [1, 64], strides = [1, 1]} : vector<2x64xf32> to vector<1x64xf32>
    %126 = arith.mulf %106, %106 : vector<8x64xf32>
    %127 = vector.broadcast %125 : vector<1x64xf32> to vector<8x64xf32>
    %128 = arith.mulf %126, %127 : vector<8x64xf32>
    %129 = vector.shape_cast %128 : vector<8x64xf32> to vector<1x8x64xf32>
    %cst_64 = arith.constant dense<0.000000e+00> : vector<1xf32>
    %130 = vector.multi_reduction <add>, %129, %cst_64 [1, 2] : vector<1x8x64xf32> to vector<1xf32>
    %131 = vector.shape_cast %130 : vector<1xf32> to vector<1x1x1xf32>
    %132 = vector.extract %131[0, 0, 0] : f32 from vector<1x1x1xf32>
    %133 = vector.broadcast %132 : f32 to vector<1x1xf32>
    %cst_65 = arith.constant 3.906250e-03 : f32
    %134 = vector.broadcast %cst_65 : f32 to vector<1x1xf32>
    %135 = arith.mulf %133, %134 : vector<1x1xf32>
    %cst_66 = arith.constant 9.99999974E-6 : f32
    %136 = vector.broadcast %cst_66 : f32 to vector<1x1xf32>
    %137 = arith.addf %135, %136 : vector<1x1xf32>
    %138 = math.rsqrt %137 : vector<1x1xf32>
    %139 = vector.broadcast %138 : vector<1x1xf32> to vector<1x64xf32>
    %140 = arith.mulf %139, %125 : vector<1x64xf32>
    %141 = arith.addf %124, %140 : vector<1x64xf32>
    %c0_67 = arith.constant 0 : index
    %c0_68 = arith.constant 0 : index
    %142 = vector.load %arg7[%c0_67, %c0_68] : memref<1x64xf32, #tpu.memory_space<vmem>>, vector<1x64xf32>
    %143 = arith.mulf %141, %142 : vector<1x64xf32>
    %144 = vector.broadcast %143 : vector<1x64xf32> to vector<8x64xf32>
    %145 = arith.mulf %106, %144 : vector<8x64xf32>
    %c0_69 = arith.constant 0 : index
    %c0_70 = arith.constant 0 : index
    %146 = vector.load %arg8[%c0_69, %c0_70] : memref<1x64xf32, #tpu.memory_space<vmem>>, vector<1x64xf32>
    %147 = vector.broadcast %146 : vector<1x64xf32> to vector<8x64xf32>
    %148 = arith.addf %145, %147 : vector<8x64xf32>
    %cst_71 = arith.constant 0.000000e+00 : f32
    %149 = vector.broadcast %cst_71 : f32 to vector<8x64xf32>
    %150 = arith.cmpf ogt, %148, %149 : vector<8x64xf32>
    %cst_72 = arith.constant 0.000000e+00 : f32
    %151 = vector.broadcast %cst_72 : f32 to vector<8x64xf32>
    %152 = arith.minimumf %148, %151 : vector<8x64xf32>
    %153 = math.exp %152 : vector<8x64xf32>
    %cst_73 = arith.constant 1.000000e+00 : f32
    %154 = vector.broadcast %cst_73 : f32 to vector<8x64xf32>
    %155 = arith.subf %153, %154 : vector<8x64xf32>
    %156 = arith.select %150, %148, %155 : vector<8x64xi1>, vector<8x64xf32>
    %cst_74 = arith.constant 0.000000e+00 : f32
    %157 = vector.broadcast %cst_74 : f32 to vector<1x64xf32>
    %c0_75 = arith.constant 0 : index
    %c0_76 = arith.constant 0 : index
    %158 = vector.load %arg22[%c0_75, %c0_76] : memref<10x64xf32, #tpu.memory_space<vmem>>, vector<1x64xf32>
    tpu.vector_store %arg22[%c0_75, %c0_76], %157 {strides = array<i32>} : memref<10x64xf32, #tpu.memory_space<vmem>>, vector<1x64xf32>,
    %c9 = arith.constant 9 : index
    %c0_77 = arith.constant 0 : index
    %159 = vector.load %arg22[%c9, %c0_77] : memref<10x64xf32, #tpu.memory_space<vmem>>, vector<1x64xf32>
    tpu.vector_store %arg22[%c9, %c0_77], %157 {strides = array<i32>} : memref<10x64xf32, #tpu.memory_space<vmem>>, vector<1x64xf32>,
    %c1_78 = arith.constant 1 : index
    %c0_79 = arith.constant 0 : index
    %160 = vector.load %arg22[%c1_78, %c0_79] : memref<10x64xf32, #tpu.memory_space<vmem>>, vector<8x64xf32>
    tpu.vector_store %arg22[%c1_78, %c0_79], %156 {strides = array<i32>} : memref<10x64xf32, #tpu.memory_space<vmem>>, vector<8x64xf32>,
    %c0_80 = arith.constant 0 : index
    %c0_81 = arith.constant 0 : index
    %161 = vector.load %arg22[%c0_80, %c0_81] : memref<10x64xf32, #tpu.memory_space<vmem>>, vector<8x64xf32>
    %162 = arith.truncf %161 : vector<8x64xf32> to vector<8x64xbf16>
    %c0_82 = arith.constant 0 : index
    %c0_83 = arith.constant 0 : index
    %c0_84 = arith.constant 0 : index
    %163 = vector.load %arg10[%c0_82, %c0_83, %c0_84] : memref<3x64x64xbf16, #tpu.memory_space<vmem>>, vector<1x64x64xbf16>
    %164 = vector.shape_cast %163 : vector<1x64x64xbf16> to vector<64x64xbf16>
    %cst_85 = arith.constant dense<0.000000e+00> : vector<8x64xf32>
    %165 = tpu.matmul %162, %164, %cst_85 {dimension_numbers = #tpu.dot_dimension_numbers<[1], [0], [0], [1], [0, 0, 1, 1], [], []>} : vector<8x64xbf16>, vector<64x64xbf16>, vector<8x64xf32> -> vector<8x64xf32>
    %166 = arith.truncf %156 : vector<8x64xf32> to vector<8x64xbf16>
    %c1_86 = arith.constant 1 : index
    %c0_87 = arith.constant 0 : index
    %c0_88 = arith.constant 0 : index
    %167 = vector.load %arg10[%c1_86, %c0_87, %c0_88] : memref<3x64x64xbf16, #tpu.memory_space<vmem>>, vector<1x64x64xbf16>
    %168 = vector.shape_cast %167 : vector<1x64x64xbf16> to vector<64x64xbf16>
    %cst_89 = arith.constant dense<0.000000e+00> : vector<8x64xf32>
    %169 = tpu.matmul %166, %168, %cst_89 {dimension_numbers = #tpu.dot_dimension_numbers<[1], [0], [0], [1], [0, 0, 1, 1], [], []>} : vector<8x64xbf16>, vector<64x64xbf16>, vector<8x64xf32> -> vector<8x64xf32>
    %170 = arith.addf %165, %169 : vector<8x64xf32>
    %c2_90 = arith.constant 2 : index
    %c0_91 = arith.constant 0 : index
    %171 = vector.load %arg22[%c2_90, %c0_91] : memref<10x64xf32, #tpu.memory_space<vmem>>, vector<8x64xf32>
    %172 = arith.truncf %171 : vector<8x64xf32> to vector<8x64xbf16>
    %c2_92 = arith.constant 2 : index
    %c0_93 = arith.constant 0 : index
    %c0_94 = arith.constant 0 : index
    %173 = vector.load %arg10[%c2_92, %c0_93, %c0_94] : memref<3x64x64xbf16, #tpu.memory_space<vmem>>, vector<1x64x64xbf16>
    %174 = vector.shape_cast %173 : vector<1x64x64xbf16> to vector<64x64xbf16>
    %cst_95 = arith.constant dense<0.000000e+00> : vector<8x64xf32>
    %175 = tpu.matmul %172, %174, %cst_95 {dimension_numbers = #tpu.dot_dimension_numbers<[1], [0], [0], [1], [0, 0, 1, 1], [], []>} : vector<8x64xbf16>, vector<64x64xbf16>, vector<8x64xf32> -> vector<8x64xf32>
    %176 = arith.addf %170, %175 : vector<8x64xf32>
    %c0_96 = arith.constant 0 : index
    %c0_97 = arith.constant 0 : index
    %177 = vector.load %arg13[%c0_96, %c0_97] : memref<2x64xf32, #tpu.memory_space<vmem>>, vector<2x64xf32>
    %cst_98 = arith.constant 0.000000e+00 : f32
    %178 = vector.broadcast %cst_98 : f32 to vector<1x64xf32>
    %179 = vector.extract_strided_slice %177 {offsets = [0, 0], sizes = [1, 64], strides = [1, 1]} : vector<2x64xf32> to vector<1x64xf32>
    %180 = vector.broadcast %179 : vector<1x64xf32> to vector<8x64xf32>
    %181 = arith.mulf %176, %180 : vector<8x64xf32>
    %182 = vector.shape_cast %181 : vector<8x64xf32> to vector<1x8x64xf32>
    %cst_99 = arith.constant dense<0.000000e+00> : vector<1xf32>
    %183 = vector.multi_reduction <add>, %182, %cst_99 [1, 2] : vector<1x8x64xf32> to vector<1xf32>
    %184 = vector.shape_cast %183 : vector<1xf32> to vector<1x1x1xf32>
    %185 = vector.extract %184[0, 0, 0] : f32 from vector<1x1x1xf32>
    %186 = vector.broadcast %185 : f32 to vector<1x1xf32>
    %cst_100 = arith.constant 3.906250e-03 : f32
    %187 = vector.broadcast %cst_100 : f32 to vector<1x1xf32>
    %188 = arith.mulf %186, %187 : vector<1x1xf32>
    %189 = vector.broadcast %188 : vector<1x1xf32> to vector<1x64xf32>
    %190 = arith.mulf %189, %179 : vector<1x64xf32>
    %191 = arith.addf %178, %190 : vector<1x64xf32>
    %192 = vector.extract_strided_slice %177 {offsets = [1, 0], sizes = [1, 64], strides = [1, 1]} : vector<2x64xf32> to vector<1x64xf32>
    %193 = vector.broadcast %192 : vector<1x64xf32> to vector<8x64xf32>
    %194 = arith.mulf %176, %193 : vector<8x64xf32>
    %195 = vector.shape_cast %194 : vector<8x64xf32> to vector<1x8x64xf32>
    %cst_101 = arith.constant dense<0.000000e+00> : vector<1xf32>
    %196 = vector.multi_reduction <add>, %195, %cst_101 [1, 2] : vector<1x8x64xf32> to vector<1xf32>
    %197 = vector.shape_cast %196 : vector<1xf32> to vector<1x1x1xf32>
    %198 = vector.extract %197[0, 0, 0] : f32 from vector<1x1x1xf32>
    %199 = vector.broadcast %198 : f32 to vector<1x1xf32>
    %cst_102 = arith.constant 3.906250e-03 : f32
    %200 = vector.broadcast %cst_102 : f32 to vector<1x1xf32>
    %201 = arith.mulf %199, %200 : vector<1x1xf32>
    %202 = vector.broadcast %201 : vector<1x1xf32> to vector<1x64xf32>
    %203 = arith.mulf %202, %192 : vector<1x64xf32>
    %204 = arith.addf %191, %203 : vector<1x64xf32>
    %205 = vector.broadcast %204 : vector<1x64xf32> to vector<8x64xf32>
    %206 = arith.subf %176, %205 : vector<8x64xf32>
    %cst_103 = arith.constant 0.000000e+00 : f32
    %207 = vector.broadcast %cst_103 : f32 to vector<1x64xf32>
    %208 = vector.extract_strided_slice %177 {offsets = [0, 0], sizes = [1, 64], strides = [1, 1]} : vector<2x64xf32> to vector<1x64xf32>
    %209 = arith.mulf %206, %206 : vector<8x64xf32>
    %210 = vector.broadcast %208 : vector<1x64xf32> to vector<8x64xf32>
    %211 = arith.mulf %209, %210 : vector<8x64xf32>
    %212 = vector.shape_cast %211 : vector<8x64xf32> to vector<1x8x64xf32>
    %cst_104 = arith.constant dense<0.000000e+00> : vector<1xf32>
    %213 = vector.multi_reduction <add>, %212, %cst_104 [1, 2] : vector<1x8x64xf32> to vector<1xf32>
    %214 = vector.shape_cast %213 : vector<1xf32> to vector<1x1x1xf32>
    %215 = vector.extract %214[0, 0, 0] : f32 from vector<1x1x1xf32>
    %216 = vector.broadcast %215 : f32 to vector<1x1xf32>
    %cst_105 = arith.constant 3.906250e-03 : f32
    %217 = vector.broadcast %cst_105 : f32 to vector<1x1xf32>
    %218 = arith.mulf %216, %217 : vector<1x1xf32>
    %cst_106 = arith.constant 9.99999974E-6 : f32
    %219 = vector.broadcast %cst_106 : f32 to vector<1x1xf32>
    %220 = arith.addf %218, %219 : vector<1x1xf32>
    %221 = math.rsqrt %220 : vector<1x1xf32>
    %222 = vector.broadcast %221 : vector<1x1xf32> to vector<1x64xf32>
    %223 = arith.mulf %222, %208 : vector<1x64xf32>
    %224 = arith.addf %207, %223 : vector<1x64xf32>
    %225 = vector.extract_strided_slice %177 {offsets = [1, 0], sizes = [1, 64], strides = [1, 1]} : vector<2x64xf32> to vector<1x64xf32>
    %226 = arith.mulf %206, %206 : vector<8x64xf32>
    %227 = vector.broadcast %225 : vector<1x64xf32> to vector<8x64xf32>
    %228 = arith.mulf %226, %227 : vector<8x64xf32>
    %229 = vector.shape_cast %228 : vector<8x64xf32> to vector<1x8x64xf32>
    %cst_107 = arith.constant dense<0.000000e+00> : vector<1xf32>
    %230 = vector.multi_reduction <add>, %229, %cst_107 [1, 2] : vector<1x8x64xf32> to vector<1xf32>
    %231 = vector.shape_cast %230 : vector<1xf32> to vector<1x1x1xf32>
    %232 = vector.extract %231[0, 0, 0] : f32 from vector<1x1x1xf32>
    %233 = vector.broadcast %232 : f32 to vector<1x1xf32>
    %cst_108 = arith.constant 3.906250e-03 : f32
    %234 = vector.broadcast %cst_108 : f32 to vector<1x1xf32>
    %235 = arith.mulf %233, %234 : vector<1x1xf32>
    %cst_109 = arith.constant 9.99999974E-6 : f32
    %236 = vector.broadcast %cst_109 : f32 to vector<1x1xf32>
    %237 = arith.addf %235, %236 : vector<1x1xf32>
    %238 = math.rsqrt %237 : vector<1x1xf32>
    %239 = vector.broadcast %238 : vector<1x1xf32> to vector<1x64xf32>
    %240 = arith.mulf %239, %225 : vector<1x64xf32>
    %241 = arith.addf %224, %240 : vector<1x64xf32>
    %c0_110 = arith.constant 0 : index
    %c0_111 = arith.constant 0 : index
    %242 = vector.load %arg11[%c0_110, %c0_111] : memref<1x64xf32, #tpu.memory_space<vmem>>, vector<1x64xf32>
    %243 = arith.mulf %241, %242 : vector<1x64xf32>
    %244 = vector.broadcast %243 : vector<1x64xf32> to vector<8x64xf32>
    %245 = arith.mulf %206, %244 : vector<8x64xf32>
    %c0_112 = arith.constant 0 : index
    %c0_113 = arith.constant 0 : index
    %246 = vector.load %arg12[%c0_112, %c0_113] : memref<1x64xf32, #tpu.memory_space<vmem>>, vector<1x64xf32>
    %247 = vector.broadcast %246 : vector<1x64xf32> to vector<8x64xf32>
    %248 = arith.addf %245, %247 : vector<8x64xf32>
    %cst_114 = arith.constant 0.000000e+00 : f32
    %249 = vector.broadcast %cst_114 : f32 to vector<8x64xf32>
    %250 = arith.cmpf ogt, %248, %249 : vector<8x64xf32>
    %cst_115 = arith.constant 0.000000e+00 : f32
    %251 = vector.broadcast %cst_115 : f32 to vector<8x64xf32>
    %252 = arith.minimumf %248, %251 : vector<8x64xf32>
    %253 = math.exp %252 : vector<8x64xf32>
    %cst_116 = arith.constant 1.000000e+00 : f32
    %254 = vector.broadcast %cst_116 : f32 to vector<8x64xf32>
    %255 = arith.subf %253, %254 : vector<8x64xf32>
    %256 = arith.select %250, %248, %255 : vector<8x64xi1>, vector<8x64xf32>
    %257 = arith.addf %256, %156 : vector<8x64xf32>
    %c1_117 = arith.constant 1 : index
    %c0_118 = arith.constant 0 : index
    %258 = vector.load %arg22[%c1_117, %c0_118] : memref<10x64xf32, #tpu.memory_space<vmem>>, vector<8x64xf32>
    tpu.vector_store %arg22[%c1_117, %c0_118], %257 {strides = array<i32>} : memref<10x64xf32, #tpu.memory_space<vmem>>, vector<8x64xf32>,
    %c0_119 = arith.constant 0 : index
    %c0_120 = arith.constant 0 : index
    %259 = tpu.strided_load %arg22[%c0_119, %c0_120] {strides = array<i32: 2, 1>} : memref<10x64xf32, #tpu.memory_space<vmem>>, vector<4x64xf32>
    %260 = arith.truncf %259 : vector<4x64xf32> to vector<4x64xbf16>
    %c0_121 = arith.constant 0 : index
    %c0_122 = arith.constant 0 : index
    %c0_123 = arith.constant 0 : index
    %261 = vector.load %arg14[%c0_121, %c0_122, %c0_123] : memref<3x64x64xbf16, #tpu.memory_space<vmem>>, vector<1x64x64xbf16>
    %262 = vector.shape_cast %261 : vector<1x64x64xbf16> to vector<64x64xbf16>
    %cst_124 = arith.constant dense<0.000000e+00> : vector<4x64xf32>
    %263 = tpu.matmul %260, %262, %cst_124 {dimension_numbers = #tpu.dot_dimension_numbers<[1], [0], [0], [1], [0, 0, 1, 1], [], []>} : vector<4x64xbf16>, vector<64x64xbf16>, vector<4x64xf32> -> vector<4x64xf32>
    %c1_125 = arith.constant 1 : index
    %c0_126 = arith.constant 0 : index
    %264 = tpu.strided_load %arg22[%c1_125, %c0_126] {strides = array<i32: 2, 1>} : memref<10x64xf32, #tpu.memory_space<vmem>>, vector<4x64xf32>
    %265 = arith.truncf %264 : vector<4x64xf32> to vector<4x64xbf16>
    %c1_127 = arith.constant 1 : index
    %c0_128 = arith.constant 0 : index
    %c0_129 = arith.constant 0 : index
    %266 = vector.load %arg14[%c1_127, %c0_128, %c0_129] : memref<3x64x64xbf16, #tpu.memory_space<vmem>>, vector<1x64x64xbf16>
    %267 = vector.shape_cast %266 : vector<1x64x64xbf16> to vector<64x64xbf16>
    %cst_130 = arith.constant dense<0.000000e+00> : vector<4x64xf32>
    %268 = tpu.matmul %265, %267, %cst_130 {dimension_numbers = #tpu.dot_dimension_numbers<[1], [0], [0], [1], [0, 0, 1, 1], [], []>} : vector<4x64xbf16>, vector<64x64xbf16>, vector<4x64xf32> -> vector<4x64xf32>
    %269 = arith.addf %263, %268 : vector<4x64xf32>
    %c2_131 = arith.constant 2 : index
    %c0_132 = arith.constant 0 : index
    %270 = tpu.strided_load %arg22[%c2_131, %c0_132] {strides = array<i32: 2, 1>} : memref<10x64xf32, #tpu.memory_space<vmem>>, vector<4x64xf32>
    %271 = arith.truncf %270 : vector<4x64xf32> to vector<4x64xbf16>
    %c2_133 = arith.constant 2 : index
    %c0_134 = arith.constant 0 : index
    %c0_135 = arith.constant 0 : index
    %272 = vector.load %arg14[%c2_133, %c0_134, %c0_135] : memref<3x64x64xbf16, #tpu.memory_space<vmem>>, vector<1x64x64xbf16>
    %273 = vector.shape_cast %272 : vector<1x64x64xbf16> to vector<64x64xbf16>
    %cst_136 = arith.constant dense<0.000000e+00> : vector<4x64xf32>
    %274 = tpu.matmul %271, %273, %cst_136 {dimension_numbers = #tpu.dot_dimension_numbers<[1], [0], [0], [1], [0, 0, 1, 1], [], []>} : vector<4x64xbf16>, vector<64x64xbf16>, vector<4x64xf32> -> vector<4x64xf32>
    %275 = arith.addf %269, %274 : vector<4x64xf32>
    %c0_137 = arith.constant 0 : index
    %c0_138 = arith.constant 0 : index
    %276 = vector.load %arg17[%c0_137, %c0_138] : memref<4x64xf32, #tpu.memory_space<vmem>>, vector<4x64xf32>
    %cst_139 = arith.constant 0.000000e+00 : f32
    %277 = vector.broadcast %cst_139 : f32 to vector<1x64xf32>
    %278 = vector.extract_strided_slice %276 {offsets = [0, 0], sizes = [1, 64], strides = [1, 1]} : vector<4x64xf32> to vector<1x64xf32>
    %279 = vector.broadcast %278 : vector<1x64xf32> to vector<4x64xf32>
    %280 = arith.mulf %275, %279 : vector<4x64xf32>
    %281 = vector.shape_cast %280 : vector<4x64xf32> to vector<1x4x64xf32>
    %cst_140 = arith.constant dense<0.000000e+00> : vector<1xf32>
    %282 = vector.multi_reduction <add>, %281, %cst_140 [1, 2] : vector<1x4x64xf32> to vector<1xf32>
    %283 = vector.shape_cast %282 : vector<1xf32> to vector<1x1x1xf32>
    %284 = vector.extract %283[0, 0, 0] : f32 from vector<1x1x1xf32>
    %285 = vector.broadcast %284 : f32 to vector<1x1xf32>
    %cst_141 = arith.constant 1.562500e-02 : f32
    %286 = vector.broadcast %cst_141 : f32 to vector<1x1xf32>
    %287 = arith.mulf %285, %286 : vector<1x1xf32>
    %288 = vector.broadcast %287 : vector<1x1xf32> to vector<1x64xf32>
    %289 = arith.mulf %288, %278 : vector<1x64xf32>
    %290 = arith.addf %277, %289 : vector<1x64xf32>
    %291 = vector.extract_strided_slice %276 {offsets = [1, 0], sizes = [1, 64], strides = [1, 1]} : vector<4x64xf32> to vector<1x64xf32>
    %292 = vector.broadcast %291 : vector<1x64xf32> to vector<4x64xf32>
    %293 = arith.mulf %275, %292 : vector<4x64xf32>
    %294 = vector.shape_cast %293 : vector<4x64xf32> to vector<1x4x64xf32>
    %cst_142 = arith.constant dense<0.000000e+00> : vector<1xf32>
    %295 = vector.multi_reduction <add>, %294, %cst_142 [1, 2] : vector<1x4x64xf32> to vector<1xf32>
    %296 = vector.shape_cast %295 : vector<1xf32> to vector<1x1x1xf32>
    %297 = vector.extract %296[0, 0, 0] : f32 from vector<1x1x1xf32>
    %298 = vector.broadcast %297 : f32 to vector<1x1xf32>
    %cst_143 = arith.constant 1.562500e-02 : f32
    %299 = vector.broadcast %cst_143 : f32 to vector<1x1xf32>
    %300 = arith.mulf %298, %299 : vector<1x1xf32>
    %301 = vector.broadcast %300 : vector<1x1xf32> to vector<1x64xf32>
    %302 = arith.mulf %301, %291 : vector<1x64xf32>
    %303 = arith.addf %290, %302 : vector<1x64xf32>
    %304 = vector.extract_strided_slice %276 {offsets = [2, 0], sizes = [1, 64], strides = [1, 1]} : vector<4x64xf32> to vector<1x64xf32>
    %305 = vector.broadcast %304 : vector<1x64xf32> to vector<4x64xf32>
    %306 = arith.mulf %275, %305 : vector<4x64xf32>
    %307 = vector.shape_cast %306 : vector<4x64xf32> to vector<1x4x64xf32>
    %cst_144 = arith.constant dense<0.000000e+00> : vector<1xf32>
    %308 = vector.multi_reduction <add>, %307, %cst_144 [1, 2] : vector<1x4x64xf32> to vector<1xf32>
    %309 = vector.shape_cast %308 : vector<1xf32> to vector<1x1x1xf32>
    %310 = vector.extract %309[0, 0, 0] : f32 from vector<1x1x1xf32>
    %311 = vector.broadcast %310 : f32 to vector<1x1xf32>
    %cst_145 = arith.constant 1.562500e-02 : f32
    %312 = vector.broadcast %cst_145 : f32 to vector<1x1xf32>
    %313 = arith.mulf %311, %312 : vector<1x1xf32>
    %314 = vector.broadcast %313 : vector<1x1xf32> to vector<1x64xf32>
    %315 = arith.mulf %314, %304 : vector<1x64xf32>
    %316 = arith.addf %303, %315 : vector<1x64xf32>
    %317 = vector.extract_strided_slice %276 {offsets = [3, 0], sizes = [1, 64], strides = [1, 1]} : vector<4x64xf32> to vector<1x64xf32>
    %318 = vector.broadcast %317 : vector<1x64xf32> to vector<4x64xf32>
    %319 = arith.mulf %275, %318 : vector<4x64xf32>
    %320 = vector.shape_cast %319 : vector<4x64xf32> to vector<1x4x64xf32>
    %cst_146 = arith.constant dense<0.000000e+00> : vector<1xf32>
    %321 = vector.multi_reduction <add>, %320, %cst_146 [1, 2] : vector<1x4x64xf32> to vector<1xf32>
    %322 = vector.shape_cast %321 : vector<1xf32> to vector<1x1x1xf32>
    %323 = vector.extract %322[0, 0, 0] : f32 from vector<1x1x1xf32>
    %324 = vector.broadcast %323 : f32 to vector<1x1xf32>
    %cst_147 = arith.constant 1.562500e-02 : f32
    %325 = vector.broadcast %cst_147 : f32 to vector<1x1xf32>
    %326 = arith.mulf %324, %325 : vector<1x1xf32>
    %327 = vector.broadcast %326 : vector<1x1xf32> to vector<1x64xf32>
    %328 = arith.mulf %327, %317 : vector<1x64xf32>
    %329 = arith.addf %316, %328 : vector<1x64xf32>
    %330 = vector.broadcast %329 : vector<1x64xf32> to vector<4x64xf32>
    %331 = arith.subf %275, %330 : vector<4x64xf32>
    %cst_148 = arith.constant 0.000000e+00 : f32
    %332 = vector.broadcast %cst_148 : f32 to vector<1x64xf32>
    %333 = vector.extract_strided_slice %276 {offsets = [0, 0], sizes = [1, 64], strides = [1, 1]} : vector<4x64xf32> to vector<1x64xf32>
    %334 = arith.mulf %331, %331 : vector<4x64xf32>
    %335 = vector.broadcast %333 : vector<1x64xf32> to vector<4x64xf32>
    %336 = arith.mulf %334, %335 : vector<4x64xf32>
    %337 = vector.shape_cast %336 : vector<4x64xf32> to vector<1x4x64xf32>
    %cst_149 = arith.constant dense<0.000000e+00> : vector<1xf32>
    %338 = vector.multi_reduction <add>, %337, %cst_149 [1, 2] : vector<1x4x64xf32> to vector<1xf32>
    %339 = vector.shape_cast %338 : vector<1xf32> to vector<1x1x1xf32>
    %340 = vector.extract %339[0, 0, 0] : f32 from vector<1x1x1xf32>
    %341 = vector.broadcast %340 : f32 to vector<1x1xf32>
    %cst_150 = arith.constant 1.562500e-02 : f32
    %342 = vector.broadcast %cst_150 : f32 to vector<1x1xf32>
    %343 = arith.mulf %341, %342 : vector<1x1xf32>
    %cst_151 = arith.constant 9.99999974E-6 : f32
    %344 = vector.broadcast %cst_151 : f32 to vector<1x1xf32>
    %345 = arith.addf %343, %344 : vector<1x1xf32>
    %346 = math.rsqrt %345 : vector<1x1xf32>
    %347 = vector.broadcast %346 : vector<1x1xf32> to vector<1x64xf32>
    %348 = arith.mulf %347, %333 : vector<1x64xf32>
    %349 = arith.addf %332, %348 : vector<1x64xf32>
    %350 = vector.extract_strided_slice %276 {offsets = [1, 0], sizes = [1, 64], strides = [1, 1]} : vector<4x64xf32> to vector<1x64xf32>
    %351 = arith.mulf %331, %331 : vector<4x64xf32>
    %352 = vector.broadcast %350 : vector<1x64xf32> to vector<4x64xf32>
    %353 = arith.mulf %351, %352 : vector<4x64xf32>
    %354 = vector.shape_cast %353 : vector<4x64xf32> to vector<1x4x64xf32>
    %cst_152 = arith.constant dense<0.000000e+00> : vector<1xf32>
    %355 = vector.multi_reduction <add>, %354, %cst_152 [1, 2] : vector<1x4x64xf32> to vector<1xf32>
    %356 = vector.shape_cast %355 : vector<1xf32> to vector<1x1x1xf32>
    %357 = vector.extract %356[0, 0, 0] : f32 from vector<1x1x1xf32>
    %358 = vector.broadcast %357 : f32 to vector<1x1xf32>
    %cst_153 = arith.constant 1.562500e-02 : f32
    %359 = vector.broadcast %cst_153 : f32 to vector<1x1xf32>
    %360 = arith.mulf %358, %359 : vector<1x1xf32>
    %cst_154 = arith.constant 9.99999974E-6 : f32
    %361 = vector.broadcast %cst_154 : f32 to vector<1x1xf32>
    %362 = arith.addf %360, %361 : vector<1x1xf32>
    %363 = math.rsqrt %362 : vector<1x1xf32>
    %364 = vector.broadcast %363 : vector<1x1xf32> to vector<1x64xf32>
    %365 = arith.mulf %364, %350 : vector<1x64xf32>
    %366 = arith.addf %349, %365 : vector<1x64xf32>
    %367 = vector.extract_strided_slice %276 {offsets = [2, 0], sizes = [1, 64], strides = [1, 1]} : vector<4x64xf32> to vector<1x64xf32>
    %368 = arith.mulf %331, %331 : vector<4x64xf32>
    %369 = vector.broadcast %367 : vector<1x64xf32> to vector<4x64xf32>
    %370 = arith.mulf %368, %369 : vector<4x64xf32>
    %371 = vector.shape_cast %370 : vector<4x64xf32> to vector<1x4x64xf32>
    %cst_155 = arith.constant dense<0.000000e+00> : vector<1xf32>
    %372 = vector.multi_reduction <add>, %371, %cst_155 [1, 2] : vector<1x4x64xf32> to vector<1xf32>
    %373 = vector.shape_cast %372 : vector<1xf32> to vector<1x1x1xf32>
    %374 = vector.extract %373[0, 0, 0] : f32 from vector<1x1x1xf32>
    %375 = vector.broadcast %374 : f32 to vector<1x1xf32>
    %cst_156 = arith.constant 1.562500e-02 : f32
    %376 = vector.broadcast %cst_156 : f32 to vector<1x1xf32>
    %377 = arith.mulf %375, %376 : vector<1x1xf32>
    %cst_157 = arith.constant 9.99999974E-6 : f32
    %378 = vector.broadcast %cst_157 : f32 to vector<1x1xf32>
    %379 = arith.addf %377, %378 : vector<1x1xf32>
    %380 = math.rsqrt %379 : vector<1x1xf32>
    %381 = vector.broadcast %380 : vector<1x1xf32> to vector<1x64xf32>
    %382 = arith.mulf %381, %367 : vector<1x64xf32>
    %383 = arith.addf %366, %382 : vector<1x64xf32>
    %384 = vector.extract_strided_slice %276 {offsets = [3, 0], sizes = [1, 64], strides = [1, 1]} : vector<4x64xf32> to vector<1x64xf32>
    %385 = arith.mulf %331, %331 : vector<4x64xf32>
    %386 = vector.broadcast %384 : vector<1x64xf32> to vector<4x64xf32>
    %387 = arith.mulf %385, %386 : vector<4x64xf32>
    %388 = vector.shape_cast %387 : vector<4x64xf32> to vector<1x4x64xf32>
    %cst_158 = arith.constant dense<0.000000e+00> : vector<1xf32>
    %389 = vector.multi_reduction <add>, %388, %cst_158 [1, 2] : vector<1x4x64xf32> to vector<1xf32>
    %390 = vector.shape_cast %389 : vector<1xf32> to vector<1x1x1xf32>
    %391 = vector.extract %390[0, 0, 0] : f32 from vector<1x1x1xf32>
    %392 = vector.broadcast %391 : f32 to vector<1x1xf32>
    %cst_159 = arith.constant 1.562500e-02 : f32
    %393 = vector.broadcast %cst_159 : f32 to vector<1x1xf32>
    %394 = arith.mulf %392, %393 : vector<1x1xf32>
    %cst_160 = arith.constant 9.99999974E-6 : f32
    %395 = vector.broadcast %cst_160 : f32 to vector<1x1xf32>
    %396 = arith.addf %394, %395 : vector<1x1xf32>
    %397 = math.rsqrt %396 : vector<1x1xf32>
    %398 = vector.broadcast %397 : vector<1x1xf32> to vector<1x64xf32>
    %399 = arith.mulf %398, %384 : vector<1x64xf32>
    %400 = arith.addf %383, %399 : vector<1x64xf32>
    %c0_161 = arith.constant 0 : index
    %c0_162 = arith.constant 0 : index
    %401 = vector.load %arg15[%c0_161, %c0_162] : memref<1x64xf32, #tpu.memory_space<vmem>>, vector<1x64xf32>
    %402 = arith.mulf %400, %401 : vector<1x64xf32>
    %403 = vector.broadcast %402 : vector<1x64xf32> to vector<4x64xf32>
    %404 = arith.mulf %331, %403 : vector<4x64xf32>
    %c0_163 = arith.constant 0 : index
    %c0_164 = arith.constant 0 : index
    %405 = vector.load %arg16[%c0_163, %c0_164] : memref<1x64xf32, #tpu.memory_space<vmem>>, vector<1x64xf32>
    %406 = vector.broadcast %405 : vector<1x64xf32> to vector<4x64xf32>
    %407 = arith.addf %404, %406 : vector<4x64xf32>
    %cst_165 = arith.constant 0.000000e+00 : f32
    %408 = vector.broadcast %cst_165 : f32 to vector<4x64xf32>
    %409 = arith.cmpf ogt, %407, %408 : vector<4x64xf32>
    %cst_166 = arith.constant 0.000000e+00 : f32
    %410 = vector.broadcast %cst_166 : f32 to vector<4x64xf32>
    %411 = arith.minimumf %407, %410 : vector<4x64xf32>
    %412 = math.exp %411 : vector<4x64xf32>
    %cst_167 = arith.constant 1.000000e+00 : f32
    %413 = vector.broadcast %cst_167 : f32 to vector<4x64xf32>
    %414 = arith.subf %412, %413 : vector<4x64xf32>
    %415 = arith.select %409, %407, %414 : vector<4x64xi1>, vector<4x64xf32>
    %c0_168 = arith.constant 0 : index
    %c0_169 = arith.constant 0 : index
    %416 = vector.load %arg19[%c0_168, %c0_169] : memref<1x16xf32, #tpu.memory_space<vmem>>, vector<1x16xf32>
    %417 = vector.extract_strided_slice %415 {offsets = [0, 0], sizes = [1, 64], strides = [1, 1]} : vector<4x64xf32> to vector<1x64xf32>
    %418 = arith.truncf %417 : vector<1x64xf32> to vector<1x64xbf16>
    %c0_170 = arith.constant 0 : index
    %c0_171 = arith.constant 0 : index
    %c0_172 = arith.constant 0 : index
    %419 = vector.load %arg18[%c0_170, %c0_171, %c0_172] : memref<4x64x16xbf16, #tpu.memory_space<vmem>>, vector<1x64x16xbf16>
    %420 = vector.shape_cast %419 : vector<1x64x16xbf16> to vector<64x16xbf16>
    %cst_173 = arith.constant dense<0.000000e+00> : vector<1x16xf32>
    %421 = tpu.matmul %418, %420, %cst_173 {dimension_numbers = #tpu.dot_dimension_numbers<[1], [0], [0], [1], [0, 0, 1, 1], [], []>} : vector<1x64xbf16>, vector<64x16xbf16>, vector<1x16xf32> -> vector<1x16xf32>
    %422 = arith.addf %416, %421 : vector<1x16xf32>
    %423 = vector.extract_strided_slice %415 {offsets = [1, 0], sizes = [1, 64], strides = [1, 1]} : vector<4x64xf32> to vector<1x64xf32>
    %424 = arith.truncf %423 : vector<1x64xf32> to vector<1x64xbf16>
    %c1_174 = arith.constant 1 : index
    %c0_175 = arith.constant 0 : index
    %c0_176 = arith.constant 0 : index
    %425 = vector.load %arg18[%c1_174, %c0_175, %c0_176] : memref<4x64x16xbf16, #tpu.memory_space<vmem>>, vector<1x64x16xbf16>
    %426 = vector.shape_cast %425 : vector<1x64x16xbf16> to vector<64x16xbf16>
    %cst_177 = arith.constant dense<0.000000e+00> : vector<1x16xf32>
    %427 = tpu.matmul %424, %426, %cst_177 {dimension_numbers = #tpu.dot_dimension_numbers<[1], [0], [0], [1], [0, 0, 1, 1], [], []>} : vector<1x64xbf16>, vector<64x16xbf16>, vector<1x16xf32> -> vector<1x16xf32>
    %428 = arith.addf %422, %427 : vector<1x16xf32>
    %429 = vector.extract_strided_slice %415 {offsets = [2, 0], sizes = [1, 64], strides = [1, 1]} : vector<4x64xf32> to vector<1x64xf32>
    %430 = arith.truncf %429 : vector<1x64xf32> to vector<1x64xbf16>
    %c2_178 = arith.constant 2 : index
    %c0_179 = arith.constant 0 : index
    %c0_180 = arith.constant 0 : index
    %431 = vector.load %arg18[%c2_178, %c0_179, %c0_180] : memref<4x64x16xbf16, #tpu.memory_space<vmem>>, vector<1x64x16xbf16>
    %432 = vector.shape_cast %431 : vector<1x64x16xbf16> to vector<64x16xbf16>
    %cst_181 = arith.constant dense<0.000000e+00> : vector<1x16xf32>
    %433 = tpu.matmul %430, %432, %cst_181 {dimension_numbers = #tpu.dot_dimension_numbers<[1], [0], [0], [1], [0, 0, 1, 1], [], []>} : vector<1x64xbf16>, vector<64x16xbf16>, vector<1x16xf32> -> vector<1x16xf32>
    %434 = arith.addf %428, %433 : vector<1x16xf32>
    %435 = vector.extract_strided_slice %415 {offsets = [3, 0], sizes = [1, 64], strides = [1, 1]} : vector<4x64xf32> to vector<1x64xf32>
    %436 = arith.truncf %435 : vector<1x64xf32> to vector<1x64xbf16>
    %c3 = arith.constant 3 : index
    %c0_182 = arith.constant 0 : index
    %c0_183 = arith.constant 0 : index
    %437 = vector.load %arg18[%c3, %c0_182, %c0_183] : memref<4x64x16xbf16, #tpu.memory_space<vmem>>, vector<1x64x16xbf16>
    %438 = vector.shape_cast %437 : vector<1x64x16xbf16> to vector<64x16xbf16>
    %cst_184 = arith.constant dense<0.000000e+00> : vector<1x16xf32>
    %439 = tpu.matmul %436, %438, %cst_184 {dimension_numbers = #tpu.dot_dimension_numbers<[1], [0], [0], [1], [0, 0, 1, 1], [], []>} : vector<1x64xbf16>, vector<64x16xbf16>, vector<1x16xf32> -> vector<1x16xf32>
    %440 = arith.addf %434, %439 : vector<1x16xf32>
    %c0_185 = arith.constant 0 : index
    %c0_186 = arith.constant 0 : index
    %c0_187 = arith.constant 0 : index
    %441 = vector.load %arg20[%c0_185, %c0_186, %c0_187] : memref<1x1x16xf32, #tpu.memory_space<vmem>>, vector<1x1x16xf32>
    %442 = vector.shape_cast %441 : vector<1x1x16xf32> to vector<1x16xf32>
    %443 = vector.shape_cast %440 : vector<1x16xf32> to vector<1x1x16xf32>
    tpu.vector_store %arg20[%c0_185, %c0_186, %c0_187], %443 {strides = array<i32>} : memref<1x1x16xf32, #tpu.memory_space<vmem>>, vector<1x1x16xf32>,
    return
  }
  func.func @transform_0(%arg0: i32) -> (i32, i32, i32) {
    %c0_i32 = arith.constant 0 : i32
    %c0_i32_0 = arith.constant 0 : i32
    %c0_i32_1 = arith.constant 0 : i32
    return %arg0, %c0_i32, %c0_i32_0 : i32, i32, i32
  }
  func.func @transform_1(%arg0: i32) -> (i32, i32, i32) {
    %c0_i32 = arith.constant 0 : i32
    %c0_i32_0 = arith.constant 0 : i32
    %c0_i32_1 = arith.constant 0 : i32
    %c0_i32_2 = arith.constant 0 : i32
    return %c0_i32, %c0_i32_0, %c0_i32_1 : i32, i32, i32
  }
  func.func @transform_2(%arg0: i32) -> (i32, i32) {
    %c0_i32 = arith.constant 0 : i32
    %c0_i32_0 = arith.constant 0 : i32
    %c0_i32_1 = arith.constant 0 : i32
    return %c0_i32, %c0_i32_0 : i32, i32
  }
  func.func @transform_3(%arg0: i32) -> (i32, i32) {
    %c0_i32 = arith.constant 0 : i32
    %c0_i32_0 = arith.constant 0 : i32
    %c0_i32_1 = arith.constant 0 : i32
    return %c0_i32, %c0_i32_0 : i32, i32
  }
  func.func @transform_4(%arg0: i32) -> (i32, i32) {
    %c0_i32 = arith.constant 0 : i32
    %c0_i32_0 = arith.constant 0 : i32
    %c0_i32_1 = arith.constant 0 : i32
    return %c0_i32, %c0_i32_0 : i32, i32
  }
  func.func @transform_5(%arg0: i32) -> (i32, i32, i32) {
    %c0_i32 = arith.constant 0 : i32
    %c0_i32_0 = arith.constant 0 : i32
    %c0_i32_1 = arith.constant 0 : i32
    %c0_i32_2 = arith.constant 0 : i32
    return %c0_i32, %c0_i32_0, %c0_i32_1 : i32, i32, i32
  }
  func.func @transform_6(%arg0: i32) -> (i32, i32) {
    %c0_i32 = arith.constant 0 : i32
    %c0_i32_0 = arith.constant 0 : i32
    %c0_i32_1 = arith.constant 0 : i32
    return %c0_i32, %c0_i32_0 : i32, i32
  }
  func.func @transform_7(%arg0: i32) -> (i32, i32) {
    %c0_i32 = arith.constant 0 : i32
    %c0_i32_0 = arith.constant 0 : i32
    %c0_i32_1 = arith.constant 0 : i32
    return %c0_i32, %c0_i32_0 : i32, i32
  }
  func.func @transform_8(%arg0: i32) -> (i32, i32) {
    %c0_i32 = arith.constant 0 : i32
    %c0_i32_0 = arith.constant 0 : i32
    %c0_i32_1 = arith.constant 0 : i32
    return %c0_i32, %c0_i32_0 : i32, i32
  }
  func.func @transform_9(%arg0: i32) -> (i32, i32, i32) {
    %c0_i32 = arith.constant 0 : i32
    %c0_i32_0 = arith.constant 0 : i32
    %c0_i32_1 = arith.constant 0 : i32
    %c0_i32_2 = arith.constant 0 : i32
    return %c0_i32, %c0_i32_0, %c0_i32_1 : i32, i32, i32
  }
  func.func @transform_10(%arg0: i32) -> (i32, i32) {
    %c0_i32 = arith.constant 0 : i32
    %c0_i32_0 = arith.constant 0 : i32
    %c0_i32_1 = arith.constant 0 : i32
    return %c0_i32, %c0_i32_0 : i32, i32
  }
  func.func @transform_11(%arg0: i32) -> (i32, i32) {
    %c0_i32 = arith.constant 0 : i32
    %c0_i32_0 = arith.constant 0 : i32
    %c0_i32_1 = arith.constant 0 : i32
    return %c0_i32, %c0_i32_0 : i32, i32
  }
  func.func @transform_12(%arg0: i32) -> (i32, i32) {
    %c0_i32 = arith.constant 0 : i32
    %c0_i32_0 = arith.constant 0 : i32
    %c0_i32_1 = arith.constant 0 : i32
    return %c0_i32, %c0_i32_0 : i32, i32
  }
  func.func @transform_13(%arg0: i32) -> (i32, i32, i32) {
    %c0_i32 = arith.constant 0 : i32
    %c0_i32_0 = arith.constant 0 : i32
    %c0_i32_1 = arith.constant 0 : i32
    %c0_i32_2 = arith.constant 0 : i32
    return %c0_i32, %c0_i32_0, %c0_i32_1 : i32, i32, i32
  }
  func.func @transform_14(%arg0: i32) -> (i32, i32) {
    %c0_i32 = arith.constant 0 : i32
    %c0_i32_0 = arith.constant 0 : i32
    %c0_i32_1 = arith.constant 0 : i32
    return %c0_i32, %c0_i32_0 : i32, i32
  }
  func.func @transform_15(%arg0: i32) -> (i32, i32) {
    %c0_i32 = arith.constant 0 : i32
    %c0_i32_0 = arith.constant 0 : i32
    %c0_i32_1 = arith.constant 0 : i32
    return %c0_i32, %c0_i32_0 : i32, i32
  }
  func.func @transform_16(%arg0: i32) -> (i32, i32) {
    %c0_i32 = arith.constant 0 : i32
    %c0_i32_0 = arith.constant 0 : i32
    %c0_i32_1 = arith.constant 0 : i32
    return %c0_i32, %c0_i32_0 : i32, i32
  }
  func.func @transform_17(%arg0: i32) -> (i32, i32, i32) {
    %c0_i32 = arith.constant 0 : i32
    %c0_i32_0 = arith.constant 0 : i32
    %c0_i32_1 = arith.constant 0 : i32
    %c0_i32_2 = arith.constant 0 : i32
    return %c0_i32, %c0_i32_0, %c0_i32_1 : i32, i32, i32
  }
  func.func @transform_18(%arg0: i32) -> (i32, i32) {
    %c0_i32 = arith.constant 0 : i32
    %c0_i32_0 = arith.constant 0 : i32
    %c0_i32_1 = arith.constant 0 : i32
    return %c0_i32, %c0_i32_0 : i32, i32
  }
  func.func @transform_19(%arg0: i32) -> (i32, i32, i32) {
    %c0_i32 = arith.constant 0 : i32
    %c0_i32_0 = arith.constant 0 : i32
    %c0_i32_1 = arith.constant 0 : i32
    return %arg0, %c0_i32, %c0_i32_0 : i32, i32, i32
  }
}

</mosaic_0001>

<bundles_post_ra>
// kernel: _lambda_.1
= control target key start
LH: loop header
LB: loop body
LE: loop exit
PB: predicated region body
PF: predicated region fallthrough
CT: control target
= control target key end

     0   :  { %s3443_s0 = inlined_call_operand.vmem [shape: f32[2,16,64], index: 0, kind: input, shape index: {}]   ;;  %s3444_s1 = inlined_call_operand.vmem [shape: bf16[3,64,64], index: 1, kind: input, shape index: {}]   ;;  %s3445_s2 = inlined_call_operand.vmem [shape: f32[1,64], index: 2, kind: input, shape index: {}]   ;;  %s3446_s3 = inlined_call_operand.vmem [shape: f32[1,64], index: 3, kind: input, shape index: {}]   ;;  %s3447_s4 = inlined_call_operand.vmem [shape: f32[1,64], index: 4, kind: input, shape index: {}]   ;;  %s3448_s5 = inlined_call_operand.vmem [shape: bf16[3,64,64], index: 5, kind: input, shape index: {}]   ;;  %s3449_s6 = inlined_call_operand.vmem [shape: f32[1,64], index: 6, kind: input, shape index: {}]   ;;  %s3450_s7 = inlined_call_operand.vmem [shape: f32[1,64], index: 7, kind: input, shape index: {}]   ;;  %s3451_s8 = inlined_call_operand.vmem [shape: f32[2,64], index: 8, kind: input, shape index: {}, may-alias: {8,12}]   ;;  %s3452_s9 = inlined_call_operand.vmem [shape: bf16[3,64,64], index: 9, kind: input, shape index: {}]   ;;  %s3453_s10 = inlined_call_operand.vmem [shape: f32[1,64], index: 10, kind: input, shape index: {}]   ;;  %s3454_s11 = inlined_call_operand.hbm [shape: f32[1,64], index: 11, kind: input, shape index: {}]   ;;  %s3455_s12 = inlined_call_operand.vmem [shape: f32[2,64], index: 12, kind: input, shape index: {}, may-alias: {8,12}]   ;;  %s3456_s13 = inlined_call_operand.hbm [shape: bf16[3,64,64], index: 13, kind: input, shape index: {}]   ;;  %s3457_s14 = inlined_call_operand.hbm [shape: f32[1,64], index: 14, kind: input, shape index: {}]   ;;  %s3458_s15 = inlined_call_operand.hbm [shape: f32[1,64], index: 15, kind: input, shape index: {}]   ;;  %s3459_s16 = inlined_call_operand.hbm [shape: f32[4,64], index: 16, kind: input, shape index: {}]   ;;  %s3460_s17 = inlined_call_operand.vmem [shape: bf16[4,64,16], index: 17, kind: input, shape index: {}]   ;;  %s3461_s18 = inlined_call_operand.hbm [shape: f32[1,16], index: 18, kind: input, shape index: {}]   ;;  %s3462_s19 = inlined_call_operand.vmem [shape: f32[2,1,16], index: 19, kind: output, shape index: {}]  }
   0x1   :  { %3464 = sst [smem:[#allocation18_spill]] %s3443_s0 }
   0x2   :  { %3465 = sst [smem:[#allocation19_spill]] %s3444_s1 }
   0x3   :  { %3466 = sst [smem:[#allocation20_spill]] %s3445_s2 }
   0x4   :  { %3467 = sst [smem:[#allocation21_spill]] %s3446_s3 }
   0x5   :  { %3468 = sst [smem:[#allocation22_spill]] %s3454_s11 }
   0x6   :  { %3469 = sst [smem:[#allocation23_spill]] %s3456_s13 }
   0x7   :  { %3470 = sst [smem:[#allocation24_spill]] %s3458_s15 }
   0x8   :  { %24 = vsyncpa [#allocation5], 0 }
   0x9   :  { %25 = vsyncpa [#allocation7], 0 }
   0xa   :  { %26 = vsyncpa [#allocation10], 0 }
   0xb   :  { %27 = vsyncpa [#allocation13], 0  ;;  %s3022_s28 = smov 0  }
   0xc LB: > { %s3471_s13 = sld [smem:[#allocation23_spill]]  ;;  %s3031_s20 = sadd.s32 4294967295, %s2911_s28   ;;  %s2911_s28 = sphi %s3022_s28, %s33_s28  }
   0xd   : > { %p2136_p0 = scmp.ge.s32.totalorder %s2911_s28, 1  ;;  %p468_p1 = scmp.lt.s32.totalorder %s2911_s28, 3 }
   0xe   : > { %p2648_p2 = scmp.eq.s32.totalorder %s3031_s20, 0  ;;  %s2913_s21 = smov [#allocation6]  }
   0xf   : > { %p3036_p3 = pnand %p2136_p0, %p468_p1  ;;  %s526_s2 = sshll.u32 %s2913_s21, 4  ;;  %s527_s2 = int_to_ptr.vmem [resolvable:$true] %s526_s2 }
  0x10   : > { %s3473_s15 = sld [smem:[#allocation24_spill]]  ;;  %s2914_s25 = smov [#allocation9]  }
  0x11   : > { %p2629_p4 = pneg %p3036_p3  ;;  %s553_s26 = sshll.u32 %s2914_s25, 4  ;;  %s554_s26 = int_to_ptr.vmem [resolvable:$true] %s553_s26 }
  0x12   : > { %s524_s30 = sshll.u32 %s3471_s13, 4  ;;  %s3475_s11 = sld [smem:[#allocation22_spill]]  ;;  %s525_s30 = int_to_ptr.hbm [resolvable:$true] %s524_s30 }
  0x13   : > { %p3047_p5 = pnand %p2648_p2, %p2629_p4  ;;  %s2915_s29 = smov 64  }
  0x14   : > { %s2916_s21 = smov 4   ;;  %s2917_s22 = smov [#allocation4]  }
  0x15   : > { %2635 = dma.hbm_to_vmem [thread:$0]  (!%p3047_p5), %s525_s30, 1536, %s527_s2, [#allocation7], %s2915_s29, %s2915_s29, %s2916_s21  }
  0x16   : > { %s551_s24 = sshll.u32 %s3473_s15, 4  ;;  %s512_s23 = sshll.u32 %s2917_s22, 4  ;;  %s552_s24 = int_to_ptr.hbm [resolvable:$true] %s551_s24  ;;  %s513_s23 = int_to_ptr.vmem [resolvable:$true] %s512_s23 }
  0x17   : > { %2641 = dma.hbm_to_vmem [thread:$0]  (!%p3047_p5), %s552_s24, 16, %s554_s26, [#allocation10]  }
  0x18   : > { %s510_s0 = sshll.u32 %s3475_s11, 4  ;;  %s539_s25 = sshll.u32 %s3457_s14, 4  ;;  %s511_s0 = int_to_ptr.hbm [resolvable:$true] %s510_s0  ;;  %s540_s25 = int_to_ptr.hbm [resolvable:$true] %s539_s25 }
  0x19   : > { %2632 = dma.hbm_to_vmem [thread:$0]  (!%p3047_p5), %s511_s0, 16, %s513_s23, [#allocation5]  }
  0x1a   : > { %s563_s11 = sshll.u32 %s3459_s16, 4  ;;  %s2918_s30 = smov [#allocation8]   ;;  %s564_s11 = int_to_ptr.hbm [resolvable:$true] %s563_s11 }
  0x1b   : > { %s541_s2 = sshll.u32 %s2918_s30, 4  ;;  %s2919_s24 = smov [#allocation11]   ;;  %s542_s2 = int_to_ptr.vmem [resolvable:$true] %s541_s2 }
  0x1c   : > { %2638 = dma.hbm_to_vmem [thread:$0]  (!%p3047_p5), %s540_s25, 16, %s542_s2, [#allocation7]  }
  0x1d   : > { %s565_s26 = sshll.u32 %s2919_s24, 4  ;;  %s578_s15 = sshll.u32 %s3461_s18, 4  ;;  %s566_s26 = int_to_ptr.vmem [resolvable:$true] %s565_s26  ;;  %s579_s15 = int_to_ptr.hbm [resolvable:$true] %s578_s15 }
  0x1e   : > { %2644 = dma.hbm_to_vmem [thread:$0]  (!%p3047_p5), %s564_s11, 64, %s566_s26, [#allocation10]  }
  0x1f   : > { %s2920_s0 = smov [#allocation12]   ;;  %601 = sbr.rel (%p3036_p3) target bundleno = 2532 (0x9e4), region = 96 }
  0x20   : > { %s580_s21 = sshll.u32 %s2920_s0, 4  ;;  %s581_s21 = int_to_ptr.vmem [resolvable:$true] %s580_s21 }
  0x21   : > { %2647 = dma.hbm_to_vmem [thread:$0]  (!%p3047_p5), %s579_s15, 16, %s581_s21, [#allocation13]  }
  0x24   : > { %2894 = dma.done.wait (%p2648_p2), [#allocation5], 16  }
  0x25   : > { %2896 = vsyncadd (%p2648_p2), [#allocation5], 4294967280 }
  0x26   : > { %2898 = dma.done.wait (%p2648_p2), [#allocation7], 1552  }
  0x27   : > { %2900 = vsyncadd (%p2648_p2), [#allocation7], 4294965744 }
  0x28   : > { %2902 = dma.done.wait (%p2648_p2), [#allocation10], 80  }
  0x29   : > { %2904 = vsyncadd (%p2648_p2), [#allocation10], 4294967216 }
  0x2a   : > { %2906 = dma.done.wait (%p2648_p2), [#allocation13], 16  }
  0x2b   : > { %2908 = vsyncadd (%p2648_p2), [#allocation13], 4294967280  ;;  %p681_p6 = scmp.lt.s32.totalorder %s3031_s20, 1  ;;  %vm692_vm0 = vcmask 516096   ;;  %v2921_v0 = vmov 0.0   ;;  %s3476_s22 = sld [smem:[#allocation19_spill]] }
  0x2c   : > { %693 = vst.msk [vmem:[#allocation2] sm:$0x1] %vm692_vm0, %v2921_v0  ;;  %s3477_s24 = sld [smem:[#allocation18_spill]]  ;;  %vm695_vm1 = vcmask 523264   ;;  %v2524_v61 = vld [vmem:[%s3448_s5 + $0x38] sm:$0xff] }
  0x2d   : > { %s3485_s20 = smov (!%p681_p6, %s3031_s20), 1  ;;  %694 = vst.msk [vmem:[#allocation2 + $0x11] sm:$0x1] %vm692_vm0, %v2921_v0  ;;  %v2520_v62 = vld [vmem:[%s3448_s5 + $0x18] sm:$0xff]  ;;  %981 = vmatpush.bf16.msra.mxu3 %v2524_v61  ;;  %s3478_s30 = sld [smem:[#allocation20_spill]] }
  0x2e   : > { %1192 = vst.msk [vmem:[#allocation3] sm:$0x1] %vm692_vm0, %v2921_v0  ;;  %s2504_s11 = sshll.u32 %s3485_s20, 4  ;;  %v2528_v63 = vld [vmem:[%s3448_s5 + $0x58] sm:$0xff]  ;;  %s3479_s13 = sld [smem:[#allocation21_spill]] }
  0x2f   : > { %1193 = vst.msk [vmem:[#allocation3 + $0x9] sm:$0x1] %vm692_vm0, %v2921_v0 }
  0x31   : > { %v2512_v1 = vld [vmem:[%s3476_s22 + $0x38] sm:$0xff]  ;;  %v2511_v4 = vld [vmem:[%s3476_s22 + $0x30] sm:$0xff]  ;;  %v2510_v9 = vld [vmem:[%s3476_s22 + $0x28] sm:$0xff] }
  0x32   : > { %v2508_v2 = vld [vmem:[%s3476_s22 + $0x18] sm:$0xff]  ;;  %s685_s26 = scalar_lea.vmem %s3477_s24, %s2504_s11  ;;  %750 = vmatpush.bf16.msra.mxu0 %v2512_v1  ;;  %v2507_v5 = vld [vmem:[%s3476_s22 + $0x10] sm:$0xff]  ;;  %v2506_v10 = vld [vmem:[%s3476_s22 + $0x8] sm:$0xff] }
  0x33   : > { %v2516_v3 = vld [vmem:[%s3476_s22 + $0x58] sm:$0xff]  ;;  %791 = vmatpush.bf16.msra.mxu1 %v2508_v2  ;;  %v2515_v6 = vld [vmem:[%s3476_s22 + $0x50] sm:$0xff]  ;;  %v3119_v7 = vld [vmem:[%s685_s26] sm:$0xff] }
  0x34   : > { %844 = vmatpush.bf16.msra.mxu2 %v2516_v3  ;;  %v3121_v8 = vld [vmem:[%s685_s26 + $0x8] sm:$0xff]  ;;  %696 = vst.msk [vmem:[#allocation2 + $0x1] sm:$0xff] %vm695_vm1, %v3119_v7  ;;  %v2509_v12 = vld [vmem:[%s3476_s22 + $0x20] sm:$0xff]  ;;  %v2523_v2 = vld [vmem:[%s3448_s5 + $0x30] sm:$0xff] }
  0x35   : > { %697 = vst.msk [vmem:[#allocation2 + $0x9] sm:$0xff] %vm695_vm1, %v3121_v8  ;;  %v2514_v11 = vld [vmem:[%s3476_s22 + $0x48] sm:$0xff]  ;;  %v2505_v13 = vld [vmem:[%s3476_s22] sm:$0xff]  ;;  %v709_v16 = vpack.c.bf16 %v3121_v8, %v3119_v7  ;;  %v2519_v3 = vld [vmem:[%s3448_s5 + $0x10] sm:$0xff]  ;;  %982 = vmatpush.bf16.msra.mxu3 %v2523_v2 }
  0x36   : > { %751 = vmatpush.bf16.msra.mxu0 %v2511_v4  ;;  %v2513_v14 = vld [vmem:[%s3476_s22 + $0x40] sm:$0xff] }
  0x37   : > { %792 = vmatpush.bf16.msra.mxu1 %v2507_v5  ;;  %v2527_v5 = vld [vmem:[%s3448_s5 + $0x50] sm:$0xff] }
  0x38   : > { %845 = vmatpush.bf16.msra.mxu2 %v2515_v6 }
  0x3a   : > { %752 = vmatpush.bf16.msra.mxu0 %v2510_v9  ;;  %v2522_v9 = vld [vmem:[%s3448_s5 + $0x28] sm:$0xff] }
  0x3b   : > { %793 = vmatpush.bf16.msra.mxu1 %v2506_v10  ;;  %v698_v15 = vld [vmem:[#allocation2] sm:$0xff]  ;;  %v2518_v10 = vld [vmem:[%s3448_s5 + $0x8] sm:$0xff]  ;;  %983 = vmatpush.bf16.msra.mxu3 %v2522_v9 }
  0x3c   : > { %846 = vmatpush.bf16.msra.mxu2 %v2514_v11  ;;  %v699_v17 = vld [vmem:[#allocation2 + $0x8] sm:$0xff] }
  0x3d   : > { %v801_v18 = vld [vmem:[#allocation2 + $0x2] sm:$0xff]  ;;  %v802_v19 = vld [vmem:[#allocation2 + $0xa] sm:$0xff]  ;;  %v700_v20 = vpack.c.bf16 %v699_v17, %v698_v15 }
  0x3e   : > { %753 = vmatpush.bf16.msra.mxu0 %v2509_v12  ;;  %v803_v21 = vpack.c.bf16 %v802_v19, %v801_v18  ;;  %v2526_v11 = vld [vmem:[%s3448_s5 + $0x48] sm:$0xff]  ;;  %v2525_v17 = vld [vmem:[%s3448_s5 + $0x40] sm:$0xff] }
  0x3f   : > { %794 = vmatpush.bf16.msra.mxu1 %v2505_v13  ;;  %v2521_v13 = vld [vmem:[%s3448_s5 + $0x20] sm:$0xff] }
  0x40   : > { %847 = vmatpush.bf16.msra.mxu2 %v2513_v14  ;;  %v2517_v14 = vld [vmem:[%s3448_s5] sm:$0xff]  ;;  %984 = vmatpush.bf16.msra.mxu3 %v2521_v13 }
  0x41   : > { %2177 = vmatmul.msk.bf16.vlgmr.msra.gmra.mxu0 %vm695_vm1, %v709_v16  ;;  %v899_v16 = vld [vmem:[%s3478_s30] sm:$0x1] }
  0x42   : > { %2194 = vmatmul.msk.bf16.vlgmr.msra.gmra.mxu1 %vm695_vm1, %v700_v20  ;;  %1021 = vmatpush.bf16.msrb.mxu0 %v2520_v62 }
  0x43   : > { %2219 = vmatmul.msk.bf16.vlgmr.msra.gmra.mxu2 %vm695_vm1, %v803_v21  ;;  %1073 = vmatpush.bf16.msrb.mxu1 %v2528_v63  ;;  %v2677_v21 = vld [vmem:[%s3479_s13] ss:$0 sm:$0xff] }
  0x46   : > { %1022 = vmatpush.bf16.msrb.mxu0 %v2519_v3 }
  0x47   : > { %1074 = vmatpush.bf16.msrb.mxu1 %v2527_v5 }
  0x4a   : > { %1023 = vmatpush.bf16.msrb.mxu0 %v2518_v10 }
  0x4b   : > { %1075 = vmatpush.bf16.msrb.mxu1 %v2526_v11 }
  0x4e   : > { %1024 = vmatpush.bf16.msrb.mxu0 %v2517_v14 }
  0x4f   : > { %1076 = vmatpush.bf16.msrb.mxu1 %v2525_v17 }
  0xbe   : > { %v755_v22 = vpop.f32.mrf.mxu0 }
  0xbf   : > { %v796_v23 = vpop.f32.mrf.mxu1 }
  0xc0   : > { %v797_v25 = vadd.f32 %v796_v23, %v755_v22 }
  0xc6   : > { %v849_v24 = vpop.f32.mrf.mxu2  ;;  %v757_v26 = vpop.f32.mrf.mxu0 }
  0xc7   : > { %v798_v27 = vpop.f32.mrf.mxu1  ;;  %v854_v28 = vadd.f32 %v849_v24, %v797_v25 }
  0xc8   : > { %v799_v29 = vadd.f32 %v798_v27, %v757_v26 }
  0xc9   : > { %v856_v32 = vsel %vm695_vm1, %v854_v28, 0.0 }
  0xce   : > { %v851_v30 = vpop.f32.mrf.mxu2 }
  0xcf   : > { %v855_v31 = vadd.f32 %v851_v30, %v799_v29 }
  0xd1   : > { %v857_v33 = vsel %vm695_vm1, %v855_v31, 0.0 }
  0xd2   : > { %v858_v34 = vadd.f32 %v857_v33, %v856_v32 }
  0xd4   : > { %859 = vadd.xlane.f32.xlu0 %v858_v34 }
 0x147   : > { %v860_v35 = vpop.xlane.xlu0 %859 }
 0x148   : > { %v861_v36 = vrot.slane %v860_v35, 4 }
 0x14a   : > { %v862_v37 = vadd.f32 %v861_v36, %v860_v35 }
 0x14c   : > { %v863_v38 = vrot.slane %v862_v37, 2 }
 0x14e   : > { %v864_v39 = vadd.f32 %v863_v38, %v862_v37 }
 0x150   : > { %v865_v40 = vrot.slane %v864_v39, 1 }
 0x152   : > { %v866_v41 = vadd.f32 %v865_v40, %v864_v39 }
 0x154   : > { %2569 = vpush %v866_v41 }
 0x185   : > { %s2570_s15 = spop %2569 }
 0x186   : > { %v868_v42 = vstv %s2570_s15 }
 0x187   : > { %v869_v43 = vmul.f32 0.0009765625, %v868_v42 }
 0x189   : > { %v870_v44 = vsub.f32 %v854_v28, %v869_v43  ;;  %v871_v45 = vsub.f32 %v855_v31, %v869_v43 }
 0x18b   : > { %v872_v46 = vmul.f32 %v870_v44, %v870_v44  ;;  %v873_v47 = vmul.f32 %v871_v45, %v871_v45 }
 0x18d   : > { %v874_v48 = vsel %vm695_vm1, %v872_v46, 0.0  ;;  %v875_v49 = vsel %vm695_vm1, %v873_v47, 0.0 }
 0x18e   : > { %v876_v50 = vadd.f32 %v875_v49, %v874_v48 }
 0x190   : > { %877 = vadd.xlane.f32.xlu0 %v876_v50 }
 0x203   : > { %v878_v51 = vpop.xlane.xlu0 %877 }
 0x204   : > { %v879_v52 = vrot.slane %v878_v51, 4 }
 0x206   : > { %v880_v53 = vadd.f32 %v879_v52, %v878_v51 }
 0x208   : > { %v881_v54 = vrot.slane %v880_v53, 2 }
 0x20a   : > { %v882_v55 = vadd.f32 %v881_v54, %v880_v53 }
 0x20c   : > { %v883_v56 = vrot.slane %v882_v55, 1 }
 0x20e   : > { %v884_v57 = vadd.f32 %v883_v56, %v882_v55 }
 0x210   : > { %2571 = vpush %v884_v57 }
 0x241   : > { %s2572_s0 = spop %2571 }
 0x242   : > { %v886_v58 = vstv %s2572_s0 }
 0x243   : > { %v887_v59 = vmul.f32 0.0009765625, %v886_v58 }
 0x245   : > { %v888_v60 = vadd.f32 1e-05, %v887_v59 }
 0x247   : > { %2681 = vrsqrt.f32 %v888_v60  ;;  %vm895_vm3 = vweird.f32 %v888_v60 }
 0x24d   : > { %v2682_v0 = vpop.eup %2681 }
 0x24e   : > { %v890_v1 = vmul.f32 %v2682_v0, %v888_v60  ;;  %vm896_vm2 = vweird.f32 %v2682_v0 }
 0x24f   : > { %vm897_vm4 = vmor %vm895_vm3, %vm896_vm2 }
 0x250   : > { %v891_v4 = vmul.f32 %v2682_v0, %v890_v1 }
 0x252   : > { %v892_v6 = vmul.f32 0.5, %v891_v4 }
 0x254   : > { %v893_v12 = vsub.f32 1.5, %v892_v6 }
 0x256   : > { %v894_v15 = vmul.f32 %v2682_v0, %v893_v12 }
 0x258   : > { %v898_v18 = vsel %vm897_vm4, %v2682_v0, %v894_v15 }
 0x259   : > { %v900_v19 = vmul.f32 %v899_v16, %v898_v18 }
 0x25b   : > { %v902_v20 = vperm.slane %v900_v19, 0 }
 0x25d   : > { %v904_v22 = vmul.f32 %v902_v20, %v870_v44  ;;  %v905_v23 = vmul.f32 %v902_v20, %v871_v45 }
 0x25f   : > { %v910_v24 = vadd.f32 %v2677_v21, %v904_v22  ;;  %v911_v25 = vadd.f32 %v2677_v21, %v905_v23 }
 0x261   : > { %v914_v26 = vmin.f32 %v910_v24, 0.0  ;;  %v915_v27 = vmin.f32 %v911_v25, 0.0  ;;  %vm912_vm5 = vcmp.gt.f32.partialorder %v910_v24, 0.0  ;;  %vm913_vm6 = vcmp.gt.f32.partialorder %v911_v25, 0.0 }
 0x263   : > { %v916_v28 = vmul.f32 1.442695, %v914_v26  ;;  %v918_v29 = vmul.f32 1.442695, %v915_v27 }
 0x265   : > { %2683 = vpow2.f32 %v916_v28 }
 0x266   : > { %2685 = vpow2.f32 %v918_v29 }
 0x26b   : > { %v2684_v30 = vpop.eup %2683 }
 0x26c   : > { %v2686_v31 = vpop.eup %2685  ;;  %v2220_v32 = vadd.f32 -1.0, %v2684_v30 }
 0x26d   : > { %v2221_v33 = vadd.f32 -1.0, %v2686_v31 }
 0x26e   : > { %v922_v34 = vsel %vm912_vm5, %v910_v24, %v2220_v32 }
 0x26f   : > { %v923_v35 = vsel %vm913_vm6, %v911_v25, %v2221_v33  ;;  %v924_v36 = vadd.f32 %v922_v34, %v3119_v7  ;;  %vm1616_vm6 = vcmask 519168  }
 0x270   : > { %v925_v37 = vadd.f32 %v923_v35, %v3121_v8  ;;  %v3206_v8 = vld [vmem:[%s3451_s8] sm:$0x3] }
 0x271   : > { %926 = vst.msk [vmem:[#allocation2 + $0x1] sm:$0xff] %vm695_vm1, %v924_v36  ;;  %v1084_v47 = vperm.slane %v3206_v8, 0  ;;  %v1100_v53 = vperm.slane %v3206_v8, 1 }
 0x272   : > { %927 = vst.msk [vmem:[#allocation2 + $0x9] sm:$0xff] %vm695_vm1, %v925_v37 }
 0x279   : > { %v939_v38 = vld [vmem:[#allocation2 + $0x1] ss:$2 sm:$0xff]  ;;  %v928_v39 = vld [vmem:[#allocation2] ss:$2 sm:$0xff] }
 0x27a   : > { %v1031_v40 = vld [vmem:[#allocation2 + $0x2] ss:$2 sm:$0xff]  ;;  %v940_v41 = vpack.c.bf16 %v939_v38, %v939_v38  ;;  %v929_v42 = vpack.c.bf16 %v928_v39, %v928_v39 }
 0x27b   : > { %v1032_v43 = vpack.c.bf16 %v1031_v40, %v1031_v40 }
 0x27c   : > { %2246 = vmatmul.msk.bf16.vlgmr.msra.gmra.mxu3 %vm695_vm1, %v940_v41  ;;  %2263 = vmatmul.msk.bf16.vlgmr.msrb.gmra.mxu0 %vm695_vm1, %v929_v42  ;;  %v2536_v41 = vld [vmem:[%s3452_s9 + $0x38] sm:$0xff] }
 0x27d   : > { %2288 = vmatmul.msk.bf16.vlgmr.msrb.gmra.mxu1 %vm695_vm1, %v1032_v43  ;;  %v2532_v42 = vld [vmem:[%s3452_s9 + $0x18] sm:$0xff]  ;;  %1246 = vmatpush.bf16.msrb.mxu2 %v2536_v41 }
 0x27e   : > { %1286 = vmatpush.bf16.msrb.mxu3 %v2532_v42 }
 0x2f9   : > { %v1026_v44 = vpop.f32.mrf.mxu0 }
 0x2fa   : > { %v1078_v7 = vpop.f32.mrf.mxu1 }
 0x2ff   : > { %v986_v45 = vpop.f32.mrf.mxu3 }
 0x300   : > { %v1027_v46 = vadd.f32 %v1026_v44, %v986_v45  ;;  %v2540_v44 = vld [vmem:[%s3452_s9 + $0x58] sm:$0xff]  ;;  %v2535_v45 = vld [vmem:[%s3452_s9 + $0x30] sm:$0xff] }
 0x301   : > { %v1028_v48 = vpop.f32.mrf.mxu0  ;;  %1337 = vmatpush.bf16.msra.mxu0 %v2540_v44  ;;  %1247 = vmatpush.bf16.msrb.mxu2 %v2535_v45 }
 0x302   : > { %v1082_v49 = vadd.f32 %v1078_v7, %v1027_v46  ;;  %v1080_v50 = vpop.f32.mrf.mxu1  ;;  %v2531_v46 = vld [vmem:[%s3452_s9 + $0x10] sm:$0xff] }
 0x303   : > { %1287 = vmatpush.bf16.msrb.mxu3 %v2531_v46 }
 0x304   : > { %v1085_v51 = vmul.f32 %v1084_v47, %v1082_v49  ;;  %v1101_v55 = vmul.f32 %v1100_v53, %v1082_v49 }
 0x306   : > { %v1086_v52 = vsel %vm695_vm1, %v1085_v51, 0.0  ;;  %v1102_v56 = vsel %vm695_vm1, %v1101_v55, 0.0  ;;  %v2534_v51 = vld [vmem:[%s3452_s9 + $0x28] sm:$0xff] }
 0x307   : > { %v988_v54 = vpop.f32.mrf.mxu3  ;;  %1087 = vadd.xlane.f32.xlu1 %v1086_v52  ;;  %1248 = vmatpush.bf16.msrb.mxu2 %v2534_v51 }
 0x30f   : > { %1103 = vadd.xlane.f32.xlu1 %v1102_v56 }
 0x37a   : > { %v1088_v57 = vpop.xlane.xlu1 %1087 }
 0x37b   : > { %v1089_v58 = vrot.slane %v1088_v57, 4 }
 0x37d   : > { %v1090_v59 = vadd.f32 %v1089_v58, %v1088_v57 }
 0x37f   : > { %v1091_v60 = vrot.slane %v1090_v59, 2 }
 0x381   : > { %v1092_v61 = vadd.f32 %v1091_v60, %v1090_v59 }
 0x382   : > { %v1104_v62 = vpop.xlane.xlu1 %1103 }
 0x383   : > { %v1105_v63 = vrot.slane %v1104_v62, 4  ;;  %v1093_v0 = vrot.slane %v1092_v61, 1 }
 0x385   : > { %v1106_v1 = vadd.f32 %v1105_v63, %v1104_v62  ;;  %v1094_v2 = vadd.f32 %v1093_v0, %v1092_v61  ;;  %v2530_v63 = vld [vmem:[%s3452_s9 + $0x8] sm:$0xff] }
 0x386   : > { %v2538_v0 = vld [vmem:[%s3452_s9 + $0x48] sm:$0xff]  ;;  %1288 = vmatpush.bf16.msrb.mxu3 %v2530_v63 }
 0x387   : > { %v1107_v3 = vrot.slane %v1106_v1, 2  ;;  %2573 = vpush %v1094_v2 }
 0x389   : > { %v1108_v4 = vadd.f32 %v1107_v3, %v1106_v1 }
 0x38b   : > { %v1109_v5 = vrot.slane %v1108_v4, 1 }
 0x38d   : > { %v1110_v6 = vadd.f32 %v1109_v5, %v1108_v4  ;;  %v2529_v4 = vld [vmem:[%s3452_s9] sm:$0xff] }
 0x38e   : > { %v2537_v5 = vld [vmem:[%s3452_s9 + $0x40] sm:$0xff]  ;;  %1289 = vmatpush.bf16.msrb.mxu3 %v2529_v4 }
 0x38f   : > { %2575 = vpush %v1110_v6 }
 0x3b8   : > { %s2574_s21 = spop %2573 }
 0x3b9   : > { %v1096_v9 = vstv %s2574_s21 }
 0x3ba   : > { %v1097_v11 = vmul.f32 0.00390625, %v1096_v9 }
 0x3bc   : > { %v1098_v14 = vmul.f32 %v1097_v11, %v3206_v8 }
 0x3c0   : > { %s2576_s1 = spop %2575 }
 0x3c1   : > { %v1112_v10 = vstv %s2576_s1 }
 0x3c2   : > { %v1113_v12 = vmul.f32 0.00390625, %v1112_v10  ;;  %v1177_v10 = vld [vmem:[%s3449_s6] sm:$0x1] }
 0x3c4   : > { %v1114_v13 = vmul.f32 %v1113_v12, %v3206_v8 }
 0x3c6   : > { %v1116_v15 = vrot.slane %v1114_v13, 1 }
 0x3c8   : > { %v1118_v16 = vadd.f32 %v1116_v15, %v1098_v14  ;;  %v2678_v14 = vld [vmem:[%s3450_s7] ss:$0 sm:$0xff] }
 0x3ca   : > { %v1119_v17 = vperm.slane %v1118_v16, 0 }
 0x3cc   : > { %v3214_v18 = vsub.f32 %v1082_v49, %v1119_v17 }
 0x3ce   : > { %v1121_v19 = vmul.f32 %v3214_v18, %v3214_v18 }
 0x3d0   : > { %v1122_v20 = vmul.f32 %v1121_v19, %v1084_v47  ;;  %v1148_v22 = vmul.f32 %v1121_v19, %v1100_v53  ;;  %v2539_v47 = vld [vmem:[%s3452_s9 + $0x50] sm:$0xff]  ;;  %v2533_v53 = vld [vmem:[%s3452_s9 + $0x20] sm:$0xff] }
 0x3d1   : > { %1338 = vmatpush.bf16.msra.mxu0 %v2539_v47  ;;  %1249 = vmatpush.bf16.msrb.mxu2 %v2533_v53 }
 0x3d2   : > { %v1123_v21 = vsel %vm695_vm1, %v1122_v20, 0.0  ;;  %v1149_v23 = vsel %vm695_vm1, %v1148_v22, 0.0 }
 0x3d3   : > { %1124 = vadd.xlane.f32.xlu2 %v1123_v21 }
 0x3d5   : > { %1339 = vmatpush.bf16.msra.mxu0 %v2538_v0 }
 0x3d9   : > { %1340 = vmatpush.bf16.msra.mxu0 %v2537_v5 }
 0x3db   : > { %1150 = vadd.xlane.f32.xlu2 %v1149_v23 }
 0x446   : > { %v1125_v24 = vpop.xlane.xlu2 %1124 }
 0x447   : > { %v1126_v25 = vrot.slane %v1125_v24, 4 }
 0x449   : > { %v1127_v26 = vadd.f32 %v1126_v25, %v1125_v24 }
 0x44b   : > { %v1128_v27 = vrot.slane %v1127_v26, 2 }
 0x44d   : > { %v1129_v28 = vadd.f32 %v1128_v27, %v1127_v26 }
 0x44e   : > { %v1151_v29 = vpop.xlane.xlu2 %1150 }
 0x44f   : > { %v1152_v30 = vrot.slane %v1151_v29, 4  ;;  %v1130_v31 = vrot.slane %v1129_v28, 1 }
 0x451   : > { %v1153_v32 = vadd.f32 %v1152_v30, %v1151_v29  ;;  %v1131_v33 = vadd.f32 %v1130_v31, %v1129_v28  ;;  %v3277_v28 = vld [vmem:[%s3455_s12] sm:$0x3] }
 0x453   : > { %v1154_v34 = vrot.slane %v1153_v32, 2  ;;  %2577 = vpush %v1131_v33  ;;  %v1348_v33 = vperm.slane %v3277_v28, 0 }
 0x455   : > { %v1155_v35 = vadd.f32 %v1154_v34, %v1153_v32  ;;  %v1364_v32 = vperm.slane %v3277_v28, 1 }
 0x457   : > { %v1156_v36 = vrot.slane %v1155_v35, 1 }
 0x459   : > { %v1157_v37 = vadd.f32 %v1156_v36, %v1155_v35 }
 0x45b   : > { %2579 = vpush %v1157_v37 }
 0x484   : > { %s2578_s11 = spop %2577 }
 0x485   : > { %v1133_v38 = vstv %s2578_s11 }
 0x486   : > { %v1134_v39 = vmul.f32 0.00390625, %v1133_v38 }
 0x488   : > { %v1135_v40 = vadd.f32 1e-05, %v1134_v39 }
 0x48a   : > { %2687 = vrsqrt.f32 %v1135_v40  ;;  %vm1142_vm9 = vweird.f32 %v1135_v40 }
 0x48c   : > { %s2580_s3 = spop %2579 }
 0x48d   : > { %v1159_v43 = vstv %s2580_s3 }
 0x48e   : > { %v1160_v7 = vmul.f32 0.00390625, %v1159_v43 }
 0x490   : > { %v2688_v48 = vpop.eup %2687  ;;  %v1161_v49 = vadd.f32 1e-05, %v1160_v7 }
 0x491   : > { %v1137_v50 = vmul.f32 %v2688_v48, %v1135_v40  ;;  %vm1143_vm7 = vweird.f32 %v2688_v48 }
 0x492   : > { %2689 = vrsqrt.f32 %v1161_v49  ;;  %vm1144_vm10 = vmor %vm1142_vm9, %vm1143_vm7  ;;  %vm1168_vm11 = vweird.f32 %v1161_v49 }
 0x493   : > { %v1138_v52 = vmul.f32 %v2688_v48, %v1137_v50 }
 0x495   : > { %v1139_v54 = vmul.f32 0.5, %v1138_v52 }
 0x497   : > { %v1140_v57 = vsub.f32 1.5, %v1139_v54 }
 0x498   : > { %v2690_v55 = vpop.eup %2689 }
 0x499   : > { %v1163_v56 = vmul.f32 %v2690_v55, %v1161_v49  ;;  %v1141_v60 = vmul.f32 %v2688_v48, %v1140_v57  ;;  %vm1169_vm8 = vweird.f32 %v2690_v55 }
 0x49a   : > { %vm1170_vm12 = vmor %vm1168_vm11, %vm1169_vm8 }
 0x49b   : > { %v1164_v58 = vmul.f32 %v2690_v55, %v1163_v56  ;;  %v1145_v1 = vsel %vm1144_vm10, %v2688_v48, %v1141_v60 }
 0x49c   : > { %v1146_v6 = vmul.f32 %v1145_v1, %v3206_v8 }
 0x49d   : > { %v1165_v59 = vmul.f32 0.5, %v1164_v58 }
 0x49f   : > { %v1166_v61 = vsub.f32 1.5, %v1165_v59 }
 0x4a1   : > { %v1167_v62 = vmul.f32 %v2690_v55, %v1166_v61 }
 0x4a3   : > { %v1171_v2 = vsel %vm1170_vm12, %v2690_v55, %v1167_v62 }
 0x4a4   : > { %v1172_v3 = vmul.f32 %v1171_v2, %v3206_v8 }
 0x4a6   : > { %v1174_v9 = vrot.slane %v1172_v3, 1 }
 0x4a8   : > { %v1176_v11 = vadd.f32 %v1174_v9, %v1146_v6 }
 0x4aa   : > { %v1178_v12 = vmul.f32 %v1177_v10, %v1176_v11 }
 0x4ac   : > { %v1179_v13 = vperm.slane %v1178_v12, 0 }
 0x4ae   : > { %v1180_v15 = vmul.f32 %v1179_v13, %v3214_v18 }
 0x4b0   : > { %v1185_v16 = vadd.f32 %v2678_v14, %v1180_v15 }
 0x4b2   : > { %v1187_v17 = vmin.f32 %v1185_v16, 0.0  ;;  %vm1186_vm13 = vcmp.gt.f32.partialorder %v1185_v16, 0.0 }
 0x4b4   : > { %v1188_v19 = vmul.f32 1.442695, %v1187_v17 }
 0x4b6   : > { %2691 = vpow2.f32 %v1188_v19 }
 0x4bc   : > { %v2692_v8 = vpop.eup %2691 }
 0x4bd   : > { %v2289_v20 = vadd.f32 -1.0, %v2692_v8 }
 0x4bf   : > { %v3265_v21 = vsel %vm1186_vm13, %v1185_v16, %v2289_v20 }
 0x4c0   : > { %1194 = vst.msk [vmem:[#allocation3 + $0x1] sm:$0xff] %vm695_vm1, %v3265_v21  ;;  %v1205_v22 = vpack.c.bf16 %v3265_v21, %v3265_v21 }
 0x4c2   : > { %2314 = vmatmul.msk.bf16.vlgmr.msrb.gmra.mxu2 %vm695_vm1, %v1205_v22 }
 0x4c7   : > { %v1195_v23 = vld [vmem:[#allocation3] sm:$0xff] }
 0x4c8   : > { %v1295_v24 = vld [vmem:[#allocation3 + $0x2] sm:$0xff]  ;;  %v1196_v18 = vpack.c.bf16 %v1195_v23, %v1195_v23 }
 0x4c9   : > { %v1296_v25 = vpack.c.bf16 %v1295_v24, %v1295_v24 }
 0x4ca   : > { %2331 = vmatmul.msk.bf16.vlgmr.msrb.gmra.mxu3 %vm695_vm1, %v1196_v18 }
 0x4cb   : > { %2356 = vmatmul.msk.bf16.vlgmr.msra.gmra.mxu0 %vm695_vm1, %v1296_v25 }
 0x545   : > { %v1251_v26 = vpop.f32.mrf.mxu2 }
 0x548   : > { %v1342_v27 = vpop.f32.mrf.mxu0 }
 0x54d   : > { %v1253_v29 = vpop.f32.mrf.mxu2  ;;  %v1291_v30 = vpop.f32.mrf.mxu3 }
 0x54e   : > { %v1292_v31 = vadd.f32 %v1291_v30, %v1251_v26 }
 0x550   : > { %v1344_v34 = vpop.f32.mrf.mxu0  ;;  %v1346_v35 = vadd.f32 %v1342_v27, %v1292_v31 }
 0x551   : > { %v2544_v34 = vld [vmem:[#allocation6 + $0x18] sm:$0xff] }
 0x552   : > { %v1365_v36 = vmul.f32 %v1364_v32, %v1346_v35  ;;  %v1349_v37 = vmul.f32 %v1348_v33, %v1346_v35  ;;  %1551 = vmatpush.bf16.msra.mxu2 %v2544_v34 }
 0x554   : > { %v1366_v38 = vsel %vm695_vm1, %v1365_v36, 0.0  ;;  %v1350_v39 = vsel %vm695_vm1, %v1349_v37, 0.0  ;;  %v2552_v36 = vld [vmem:[#allocation6 + $0x58] sm:$0xff] }
 0x555   : > { %v1293_v40 = vpop.f32.mrf.mxu3  ;;  %1367 = vadd.xlane.f32.xlu1 %v1366_v38  ;;  %1351 = vadd.xlane.f32.xlu0 %v1350_v39 }
 0x556   : > { %1603 = vmatpush.bf16.msra.mxu3 %v2552_v36 }
 0x5c8   : > { %v1368_v41 = vpop.xlane.xlu1 %1367  ;;  %v1352_v42 = vpop.xlane.xlu0 %1351 }
 0x5c9   : > { %v1369_v43 = vrot.slane %v1368_v41, 4  ;;  %v1353_v44 = vrot.slane %v1352_v42, 4 }
 0x5cb   : > { %v1370_v7 = vadd.f32 %v1369_v43, %v1368_v41  ;;  %v1354_v45 = vadd.f32 %v1353_v44, %v1352_v42  ;;  %v2543_v41 = vld [vmem:[#allocation6 + $0x10] sm:$0xff] }
 0x5cc   : > { %v2547_v42 = vld [vmem:[#allocation6 + $0x30] sm:$0xff]  ;;  %1552 = vmatpush.bf16.msra.mxu2 %v2543_v41 }
 0x5cd   : > { %v1371_v46 = vrot.slane %v1370_v7, 2  ;;  %v1355_v47 = vrot.slane %v1354_v45, 2  ;;  %v2551_v43 = vld [vmem:[#allocation6 + $0x50] sm:$0xff] }
 0x5ce   : > { %1604 = vmatpush.bf16.msra.mxu3 %v2551_v43 }
 0x5cf   : > { %v1356_v48 = vadd.f32 %v1355_v47, %v1354_v45  ;;  %v1372_v49 = vadd.f32 %v1371_v46, %v1370_v7  ;;  %v2542_v46 = vld [vmem:[#allocation6 + $0x8] sm:$0xff] }
 0x5d0   : > { %v2546_v47 = vld [vmem:[#allocation6 + $0x28] sm:$0xff]  ;;  %1553 = vmatpush.bf16.msra.mxu2 %v2542_v46 }
 0x5d1   : > { %v1357_v50 = vrot.slane %v1356_v48, 1  ;;  %v1373_v51 = vrot.slane %v1372_v49, 1 }
 0x5d3   : > { %v1358_v52 = vadd.f32 %v1357_v50, %v1356_v48  ;;  %v1374_v53 = vadd.f32 %v1373_v51, %v1372_v49  ;;  %v2550_v48 = vld [vmem:[#allocation6 + $0x48] sm:$0xff] }
 0x5d4   : > { %1605 = vmatpush.bf16.msra.mxu3 %v2550_v48 }
 0x5d5   : > { %2581 = vpush %v1358_v52  ;;  %v2541_v52 = vld [vmem:[#allocation6] sm:$0xff] }
 0x5d6   : > { %2583 = vpush %v1374_v53  ;;  %v2545_v53 = vld [vmem:[#allocation6 + $0x20] sm:$0xff]  ;;  %1554 = vmatpush.bf16.msra.mxu2 %v2541_v52 }
 0x606   : > { %s2582_s11 = spop %2581 }
 0x607   : > { %v1360_v54 = vstv %s2582_s11  ;;  %s2584_s3 = spop %2583  ;;  %s688_s11 = scalar_lea.vmem %s3462_s19, %s3485_s20 }
 0x608   : > { %v1376_v55 = vstv %s2584_s3  ;;  %v1361_v56 = vmul.f32 0.00390625, %v1360_v54 }
 0x609   : > { %v1377_v57 = vmul.f32 0.00390625, %v1376_v55 }
 0x60a   : > { %v1362_v59 = vmul.f32 %v1361_v56, %v3277_v28  ;;  %v2549_v56 = vld [vmem:[#allocation6 + $0x40] sm:$0xff] }
 0x60b   : > { %v1378_v58 = vmul.f32 %v1377_v57, %v3277_v28  ;;  %v1441_v57 = vld [vmem:[%s3453_s10] sm:$0x1]  ;;  %1606 = vmatpush.bf16.msra.mxu3 %v2549_v56 }
 0x60d   : > { %v1380_v60 = vrot.slane %v1378_v58, 1 }
 0x60f   : > { %v1382_v61 = vadd.f32 %v1380_v60, %v1362_v59 }
 0x611   : > { %v1383_v62 = vperm.slane %v1382_v61, 0  ;;  %v2679_v61 = vld [vmem:[#allocation4] ss:$0 sm:$0xff] }
 0x613   : > { %v3285_v63 = vsub.f32 %v1346_v35, %v1383_v62  ;;  %v2548_v35 = vld [vmem:[#allocation6 + $0x38] sm:$0xff] }
 0x614   : > { %1511 = vmatpush.bf16.msra.mxu1 %v2548_v35 }
 0x615   : > { %v1385_v0 = vmul.f32 %v3285_v63, %v3285_v63 }
 0x617   : > { %v1412_v1 = vmul.f32 %v1385_v0, %v1364_v32  ;;  %v1386_v2 = vmul.f32 %v1385_v0, %v1348_v33 }
 0x618   : > { %1512 = vmatpush.bf16.msra.mxu1 %v2547_v42 }
 0x619   : > { %v1413_v3 = vsel %vm695_vm1, %v1412_v1, 0.0  ;;  %v1387_v4 = vsel %vm695_vm1, %v1386_v2, 0.0 }
 0x61a   : > { %1414 = vadd.xlane.f32.xlu0 %v1413_v3  ;;  %1388 = vadd.xlane.f32.xlu2 %v1387_v4 }
 0x61c   : > { %1513 = vmatpush.bf16.msra.mxu1 %v2546_v47 }
 0x620   : > { %1514 = vmatpush.bf16.msra.mxu1 %v2545_v53 }
 0x68d   : > { %v1415_v5 = vpop.xlane.xlu0 %1414  ;;  %v1389_v6 = vpop.xlane.xlu2 %1388 }
 0x68e   : > { %v1416_v9 = vrot.slane %v1415_v5, 4  ;;  %v1390_v10 = vrot.slane %v1389_v6, 4 }
 0x690   : > { %v1417_v11 = vadd.f32 %v1416_v9, %v1415_v5  ;;  %v1391_v12 = vadd.f32 %v1390_v10, %v1389_v6 }
 0x692   : > { %v1418_v13 = vrot.slane %v1417_v11, 2  ;;  %v1392_v14 = vrot.slane %v1391_v12, 2 }
 0x694   : > { %v1393_v15 = vadd.f32 %v1392_v14, %v1391_v12  ;;  %v1419_v16 = vadd.f32 %v1418_v13, %v1417_v11  ;;  %v3308_v14 = vld [vmem:[#allocation11] sm:$0xf] }
 0x696   : > { %v1394_v17 = vrot.slane %v1393_v15, 1  ;;  %v1420_v19 = vrot.slane %v1419_v16, 1 }
 0x698   : > { %v1395_v8 = vadd.f32 %v1394_v17, %v1393_v15  ;;  %v1421_v20 = vadd.f32 %v1420_v19, %v1419_v16  ;;  %v1650_v17 = vperm.slane %v3308_v14, 2  ;;  %v1631_v19 = vperm.slane %v3308_v14, 1 }
 0x69a   : > { %2585 = vpush %v1395_v8  ;;  %v1614_v8 = vperm.slane %v3308_v14, 0 }
 0x69b   : > { %2587 = vpush %v1421_v20 }
 0x6cb   : > { %s2586_s23 = spop %2585 }
 0x6cc   : > { %v1397_v22 = vstv %s2586_s23  ;;  %s2588_s25 = spop %2587 }
 0x6cd   : > { %v1398_v23 = vmul.f32 0.00390625, %v1397_v22  ;;  %v1423_v24 = vstv %s2588_s25 }
 0x6ce   : > { %v1424_v18 = vmul.f32 0.00390625, %v1423_v24 }
 0x6cf   : > { %v1399_v25 = vadd.f32 1e-05, %v1398_v23 }
 0x6d0   : > { %v1425_v26 = vadd.f32 1e-05, %v1424_v18 }
 0x6d1   : > { %2693 = vrsqrt.f32 %v1399_v25  ;;  %vm1406_vm0 = vweird.f32 %v1399_v25 }
 0x6d2   : > { %2695 = vrsqrt.f32 %v1425_v26  ;;  %vm1432_vm3 = vweird.f32 %v1425_v26 }
 0x6d7   : > { %v2694_v27 = vpop.eup %2693 }
 0x6d8   : > { %v2696_v29 = vpop.eup %2695  ;;  %v1401_v30 = vmul.f32 %v2694_v27, %v1399_v25  ;;  %vm1407_vm14 = vweird.f32 %v2694_v27 }
 0x6d9   : > { %v1427_v31 = vmul.f32 %v2696_v29, %v1425_v26  ;;  %vm1433_vm15 = vweird.f32 %v2696_v29  ;;  %vm3291_vm2 = vmor %vm1406_vm0, %vm1407_vm14 }
 0x6da   : > { %v1402_v32 = vmul.f32 %v2694_v27, %v1401_v30  ;;  %vm1434_vm4 = vmor %vm1432_vm3, %vm1433_vm15  ;;  %v1669_v30 = vperm.slane %v3308_v14, 3 }
 0x6db   : > { %v1428_v33 = vmul.f32 %v2696_v29, %v1427_v31 }
 0x6dc   : > { %v1403_v37 = vmul.f32 0.5, %v1402_v32 }
 0x6dd   : > { %v1429_v38 = vmul.f32 0.5, %v1428_v33 }
 0x6de   : > { %v1404_v39 = vsub.f32 1.5, %v1403_v37 }
 0x6df   : > { %v1430_v40 = vsub.f32 1.5, %v1429_v38 }
 0x6e0   : > { %v1405_v44 = vmul.f32 %v2694_v27, %v1404_v39 }
 0x6e1   : > { %v1431_v45 = vmul.f32 %v2696_v29, %v1430_v40 }
 0x6e2   : > { %v1409_v49 = vsel %vm3291_vm2, %v2694_v27, %v1405_v44 }
 0x6e3   : > { %v1435_v50 = vsel %vm1434_vm4, %v2696_v29, %v1431_v45  ;;  %v1410_v54 = vmul.f32 %v1409_v49, %v3277_v28 }
 0x6e4   : > { %v1436_v51 = vmul.f32 %v1435_v50, %v3277_v28 }
 0x6e6   : > { %v1438_v55 = vrot.slane %v1436_v51, 1 }
 0x6e8   : > { %v1440_v58 = vadd.f32 %v1438_v55, %v1410_v54 }
 0x6ea   : > { %v1442_v59 = vmul.f32 %v1441_v57, %v1440_v58 }
 0x6ec   : > { %v1443_v60 = vperm.slane %v1442_v59, 0 }
 0x6ee   : > { %v1444_v62 = vmul.f32 %v1443_v60, %v3285_v63 }
 0x6f0   : > { %v1449_v0 = vadd.f32 %v2679_v61, %v1444_v62 }
 0x6f2   : > { %v1451_v1 = vmin.f32 %v1449_v0, 0.0  ;;  %vm1450_vm5 = vcmp.gt.f32.partialorder %v1449_v0, 0.0 }
 0x6f4   : > { %v1452_v2 = vmul.f32 1.442695, %v1451_v1 }
 0x6f6   : > { %2697 = vpow2.f32 %v1452_v2 }
 0x6fc   : > { %v2698_v28 = vpop.eup %2697 }
 0x6fd   : > { %v2357_v3 = vadd.f32 -1.0, %v2698_v28 }
 0x6ff   : > { %v1455_v4 = vsel %vm1450_vm5, %v1449_v0, %v2357_v3  ;;  %vm2025_vm5 = vcmask 122880  }
 0x700   : > { %v1456_v5 = vadd.f32 %v1455_v4, %v3265_v21 }
 0x702   : > { %1457 = vst.msk [vmem:[#allocation3 + $0x1] sm:$0xff] %vm695_vm1, %v1456_v5 }
 0x709   : > { %v1469_v6 = vld [vmem:[#allocation3 + $0x1] ss:$2 sm:$0xf]  ;;  %v1458_v9 = vld [vmem:[#allocation3] ss:$2 sm:$0xf] }
 0x70a   : > { %v1470_v10 = vpack.c.bf16 %v1469_v6, %v1469_v6  ;;  %v1459_v11 = vpack.c.bf16 %v1458_v9, %v1458_v9  ;;  %v1561_v12 = vld [vmem:[#allocation3 + $0x2] ss:$2 sm:$0xf] }
 0x70b   : > { %v1562_v13 = vpack.c.bf16 %v1561_v12, %v1561_v12 }
 0x70c   : > { %2374 = vmatmul.msk.bf16.vlgmr.msra.gmra.mxu1 %vm695_vm1, %v1470_v10  ;;  %2391 = vmatmul.msk.bf16.vlgmr.msra.gmra.mxu2 %vm695_vm1, %v1459_v11 }
 0x70d   : > { %2408 = vmatmul.msk.bf16.vlgmr.msra.gmra.mxu3 %vm695_vm1, %v1562_v13 }
 0x789   : > { %v1516_v63 = vpop.f32.mrf.mxu1 }
 0x78f   : > { %v1556_v15 = vpop.f32.mrf.mxu2 }
 0x790   : > { %v1557_v16 = vadd.f32 %v1556_v15, %v1516_v63  ;;  %v1608_v21 = vpop.f32.mrf.mxu3 }
 0x791   : > { %v1518_v20 = vpop.f32.mrf.mxu1 }
 0x792   : > { %v3313_v22 = vadd.f32 %v1608_v21, %v1557_v16 }
 0x794   : > { %v1651_v23 = vmul.f32 %v1650_v17, %v3313_v22  ;;  %v1632_v24 = vmul.f32 %v1631_v19, %v3313_v22  ;;  %v1615_v18 = vmul.f32 %v1614_v8, %v3313_v22  ;;  %v1670_v32 = vmul.f32 %v1669_v30, %v3313_v22 }
 0x796   : > { %v1652_v25 = vsel %vm1616_vm6, %v1651_v23, 0.0  ;;  %v1633_v26 = vsel %vm1616_vm6, %v1632_v24, 0.0  ;;  %v1617_v27 = vsel %vm1616_vm6, %v1615_v18, 0.0  ;;  %v1671_v33 = vsel %vm1616_vm6, %v1670_v32, 0.0 }
 0x797   : > { %v1558_v29 = vpop.f32.mrf.mxu2  ;;  %1653 = vadd.xlane.f32.xlu0 %v1652_v25  ;;  %1634 = vadd.xlane.f32.xlu2 %v1633_v26 }
 0x798   : > { %v1610_v31 = vpop.f32.mrf.mxu3  ;;  %1618 = vadd.xlane.f32.xlu1 %v1617_v27 }
 0x7a0   : > { %1672 = vadd.xlane.f32.xlu1 %v1671_v33 }
 0x80a   : > { %v1654_v34 = vpop.xlane.xlu0 %1653  ;;  %v1635_v35 = vpop.xlane.xlu2 %1634 }
 0x80b   : > { %v1655_v36 = vrot.slane %v1654_v34, 4  ;;  %v1636_v37 = vrot.slane %v1635_v35, 4  ;;  %v1619_v38 = vpop.xlane.xlu1 %1618 }
 0x80c   : > { %v1620_v39 = vrot.slane %v1619_v38, 4 }
 0x80d   : > { %v1656_v40 = vadd.f32 %v1655_v36, %v1654_v34  ;;  %v1637_v41 = vadd.f32 %v1636_v37, %v1635_v35 }
 0x80e   : > { %v1621_v42 = vadd.f32 %v1620_v39, %v1619_v38 }
 0x80f   : > { %v1657_v43 = vrot.slane %v1656_v40, 2  ;;  %v1638_v44 = vrot.slane %v1637_v41, 2 }
 0x810   : > { %v1622_v7 = vrot.slane %v1621_v42, 2 }
 0x811   : > { %v1639_v45 = vadd.f32 %v1638_v44, %v1637_v41  ;;  %v1658_v46 = vadd.f32 %v1657_v43, %v1656_v40 }
 0x812   : > { %v1623_v47 = vadd.f32 %v1622_v7, %v1621_v42 }
 0x813   : > { %v1673_v48 = vpop.xlane.xlu1 %1672  ;;  %v1640_v49 = vrot.slane %v1639_v45, 1  ;;  %v1659_v50 = vrot.slane %v1658_v46, 1 }
 0x814   : > { %v1674_v51 = vrot.slane %v1673_v48, 4  ;;  %v1624_v52 = vrot.slane %v1623_v47, 1 }
 0x815   : > { %v1641_v53 = vadd.f32 %v1640_v49, %v1639_v45  ;;  %v1660_v56 = vadd.f32 %v1659_v50, %v1658_v46 }
 0x816   : > { %v1675_v54 = vadd.f32 %v1674_v51, %v1673_v48  ;;  %v1625_v55 = vadd.f32 %v1624_v52, %v1623_v47 }
 0x818   : > { %v1676_v57 = vrot.slane %v1675_v54, 2  ;;  %2589 = vpush %v1625_v55 }
 0x819   : > { %2591 = vpush %v1641_v53 }
 0x81a   : > { %2593 = vpush %v1660_v56  ;;  %v1677_v58 = vadd.f32 %v1676_v57, %v1675_v54 }
 0x81c   : > { %v1678_v59 = vrot.slane %v1677_v58, 1 }
 0x81e   : > { %v1679_v60 = vadd.f32 %v1678_v59, %v1677_v58 }
 0x820   : > { %2595 = vpush %v1679_v60 }
 0x849   : > { %s2590_s30 = spop %2589 }
 0x84a   : > { %v1627_v61 = vstv %s2590_s30  ;;  %s2592_s2 = spop %2591 }
 0x84b   : > { %v1643_v62 = vstv %s2592_s2  ;;  %s2594_s24 = spop %2593  ;;  %v1628_v2 = vmul.f32 0.015625, %v1627_v61 }
 0x84c   : > { %v1644_v0 = vmul.f32 0.015625, %v1643_v62  ;;  %v1662_v1 = vstv %s2594_s24 }
 0x84d   : > { %v1663_v28 = vmul.f32 0.015625, %v1662_v1  ;;  %v1629_v5 = vmul.f32 %v1628_v2, %v3308_v14 }
 0x84e   : > { %v1645_v3 = vmul.f32 %v1644_v0, %v3308_v14 }
 0x84f   : > { %v1664_v6 = vmul.f32 %v1663_v28, %v3308_v14  ;;  %v2556_v28 = vld [vmem:[%s3460_s17 + $0x18] sm:$0xff] }
 0x850   : > { %v1647_v4 = vrot.slane %v1645_v3, 1  ;;  %v2560_v3 = vld [vmem:[%s3460_s17 + $0x38] sm:$0xff]  ;;  %1860 = vmatpush.bf16.msrb.mxu0 %v2556_v28 }
 0x851   : > { %s2596_s26 = spop %2595  ;;  %v1666_v12 = vrot.slane %v1664_v6, 2  ;;  %1912 = vmatpush.bf16.msrb.mxu1 %v2560_v3 }
 0x852   : > { %v1681_v9 = vstv %s2596_s26  ;;  %v1649_v10 = vadd.f32 %v1647_v4, %v1629_v5  ;;  %v2564_v4 = vld [vmem:[%s3460_s17 + $0x58] sm:$0xff] }
 0x853   : > { %v1682_v11 = vmul.f32 0.015625, %v1681_v9  ;;  %v2568_v5 = vld [vmem:[%s3460_s17 + $0x78] sm:$0xff]  ;;  %1964 = vmatpush.bf16.msrb.mxu2 %v2564_v4 }
 0x854   : > { %v1668_v63 = vadd.f32 %v1666_v12, %v1649_v10  ;;  %v2555_v10 = vld [vmem:[%s3460_s17 + $0x10] sm:$0xff]  ;;  %2015 = vmatpush.bf16.msrb.mxu3 %v2568_v5 }
 0x855   : > { %v1683_v13 = vmul.f32 %v1682_v11, %v3308_v14  ;;  %v2559_v11 = vld [vmem:[%s3460_s17 + $0x30] sm:$0xff]  ;;  %1861 = vmatpush.bf16.msrb.mxu0 %v2555_v10 }
 0x856   : > { %1913 = vmatpush.bf16.msrb.mxu1 %v2559_v11 }
 0x857   : > { %v1685_v15 = vrot.slane %v1683_v13, 3 }
 0x859   : > { %v1687_v16 = vadd.f32 %v1685_v15, %v1668_v63  ;;  %v2563_v63 = vld [vmem:[%s3460_s17 + $0x50] sm:$0xff] }
 0x85a   : > { %v2567_v15 = vld [vmem:[%s3460_s17 + $0x70] sm:$0xff]  ;;  %1965 = vmatpush.bf16.msrb.mxu2 %v2563_v63 }
 0x85b   : > { %v1688_v21 = vperm.slane %v1687_v16, 0  ;;  %2016 = vmatpush.bf16.msrb.mxu3 %v2567_v15 }
 0x85d   : > { %v3337_v20 = vsub.f32 %v3313_v22, %v1688_v21 }
 0x85f   : > { %v1690_v23 = vmul.f32 %v3337_v20, %v3337_v20 }
 0x861   : > { %v1746_v24 = vmul.f32 %v1690_v23, %v1650_v17  ;;  %v1717_v18 = vmul.f32 %v1690_v23, %v1631_v19  ;;  %v1691_v25 = vmul.f32 %v1690_v23, %v1614_v8  ;;  %v1775_v22 = vmul.f32 %v1690_v23, %v1669_v30 }
 0x863   : > { %v1747_v26 = vsel %vm1616_vm6, %v1746_v24, 0.0  ;;  %v1718_v27 = vsel %vm1616_vm6, %v1717_v18, 0.0  ;;  %v1692_v29 = vsel %vm1616_vm6, %v1691_v25, 0.0  ;;  %v1776_v17 = vsel %vm1616_vm6, %v1775_v22, 0.0  ;;  %v2554_v25 = vld [vmem:[%s3460_s17 + $0x8] sm:$0xff] }
 0x864   : > { %1748 = vadd.xlane.f32.xlu1 %v1747_v26  ;;  %1719 = vadd.xlane.f32.xlu0 %v1718_v27  ;;  %v2558_v26 = vld [vmem:[%s3460_s17 + $0x28] sm:$0xff] }
 0x865   : > { %1693 = vadd.xlane.f32.xlu2 %v1692_v29  ;;  %v2562_v22 = vld [vmem:[%s3460_s17 + $0x48] sm:$0xff]  ;;  %1862 = vmatpush.bf16.msrb.mxu0 %v2554_v25 }
 0x866   : > { %1914 = vmatpush.bf16.msrb.mxu1 %v2558_v26  ;;  %1966 = vmatpush.bf16.msrb.mxu2 %v2562_v22 }
 0x86d   : > { %1777 = vadd.xlane.f32.xlu2 %v1776_v17  ;;  %v2566_v17 = vld [vmem:[%s3460_s17 + $0x68] sm:$0xff] }
 0x86e   : > { %2017 = vmatpush.bf16.msrb.mxu3 %v2566_v17 }
 0x8d7   : > { %v1749_v31 = vpop.xlane.xlu1 %1748  ;;  %v1720_v19 = vpop.xlane.xlu0 %1719 }
 0x8d8   : > { %v1750_v32 = vrot.slane %v1749_v31, 4  ;;  %v1721_v33 = vrot.slane %v1720_v19, 4  ;;  %v1694_v8 = vpop.xlane.xlu2 %1693 }
 0x8d9   : > { %v1695_v34 = vrot.slane %v1694_v8, 4 }
 0x8da   : > { %v1751_v35 = vadd.f32 %v1750_v32, %v1749_v31  ;;  %v1722_v36 = vadd.f32 %v1721_v33, %v1720_v19 }
 0x8db   : > { %v1696_v37 = vadd.f32 %v1695_v34, %v1694_v8  ;;  %v2553_v34 = vld [vmem:[%s3460_s17] sm:$0xff] }
 0x8dc   : > { %v1752_v38 = vrot.slane %v1751_v35, 2  ;;  %v1723_v39 = vrot.slane %v1722_v36, 2  ;;  %1863 = vmatpush.bf16.msrb.mxu0 %v2553_v34 }
 0x8dd   : > { %v1697_v40 = vrot.slane %v1696_v37, 2 }
 0x8de   : > { %v1753_v41 = vadd.f32 %v1752_v38, %v1751_v35  ;;  %v1724_v42 = vadd.f32 %v1723_v39, %v1722_v36  ;;  %v2557_v35 = vld [vmem:[%s3460_s17 + $0x20] sm:$0xff] }
 0x8df   : > { %v1698_v43 = vadd.f32 %v1697_v40, %v1696_v37  ;;  %v2561_v39 = vld [vmem:[%s3460_s17 + $0x40] sm:$0xff]  ;;  %1915 = vmatpush.bf16.msrb.mxu1 %v2557_v35 }
 0x8e0   : > { %v1778_v44 = vpop.xlane.xlu2 %1777  ;;  %v1725_v30 = vrot.slane %v1724_v42, 1  ;;  %v1754_v7 = vrot.slane %v1753_v41, 1  ;;  %1967 = vmatpush.bf16.msrb.mxu2 %v2561_v39 }
 0x8e1   : > { %v1779_v45 = vrot.slane %v1778_v44, 4  ;;  %v1699_v46 = vrot.slane %v1698_v43, 1 }
 0x8e2   : > { %v1726_v47 = vadd.f32 %v1725_v30, %v1724_v42  ;;  %v1755_v50 = vadd.f32 %v1754_v7, %v1753_v41 }
 0x8e3   : > { %v1780_v48 = vadd.f32 %v1779_v45, %v1778_v44  ;;  %v1700_v49 = vadd.f32 %v1699_v46, %v1698_v43 }
 0x8e5   : > { %v1781_v51 = vrot.slane %v1780_v48, 2  ;;  %2597 = vpush %v1700_v49 }
 0x8e6   : > { %2599 = vpush %v1726_v47 }
 0x8e7   : > { %v1782_v52 = vadd.f32 %v1781_v51, %v1780_v48  ;;  %2601 = vpush %v1755_v50 }
 0x8e9   : > { %v1783_v53 = vrot.slane %v1782_v52, 1 }
 0x8eb   : > { %v1784_v54 = vadd.f32 %v1783_v53, %v1782_v52  ;;  %v2565_v53 = vld [vmem:[%s3460_s17 + $0x60] sm:$0xff] }
 0x8ec   : > { %2018 = vmatpush.bf16.msrb.mxu3 %v2565_v53 }
 0x8ed   : > { %2603 = vpush %v1784_v54 }
 0x916   : > { %s2598_s29 = spop %2597 }
 0x917   : > { %v1702_v55 = vstv %s2598_s29  ;;  %s2600_s13 = spop %2599 }
 0x918   : > { %v1703_v56 = vmul.f32 0.015625, %v1702_v55  ;;  %v1728_v57 = vstv %s2600_s13  ;;  %s2602_s15 = spop %2601 }
 0x919   : > { %v1729_v58 = vmul.f32 0.015625, %v1728_v57  ;;  %v1757_v59 = vstv %s2602_s15 }
 0x91a   : > { %v1704_v60 = vadd.f32 1e-05, %v1703_v56  ;;  %v1758_v61 = vmul.f32 0.015625, %v1757_v59  ;;  %v1804_v59 = vld [vmem:[#allocation8] sm:$0x1] }
 0x91b   : > { %v1730_v62 = vadd.f32 1e-05, %v1729_v58 }
 0x91c   : > { %2699 = vrsqrt.f32 %v1704_v60  ;;  %v3353_v0 = vadd.f32 1e-05, %v1758_v61  ;;  %vm1711_vm8 = vweird.f32 %v1704_v60 }
 0x91d   : > { %2701 = vrsqrt.f32 %v1730_v62  ;;  %vm1737_vm12 = vweird.f32 %v1730_v62 }
 0x91e   : > { %2703 = vrsqrt.f32 %v3353_v0  ;;  %s2604_s0 = spop %2603  ;;  %vm1766_vm14 = vweird.f32 %v3353_v0 }
 0x91f   : > { %v1786_v1 = vstv %s2604_s0 }
 0x920   : > { %v1787_v2 = vmul.f32 0.015625, %v1786_v1 }
 0x922   : > { %v3368_v6 = vpop.eup %2699  ;;  %v3370_v9 = vadd.f32 1e-05, %v1787_v2 }
 0x923   : > { %v2702_v12 = vpop.eup %2701  ;;  %v1706_v13 = vmul.f32 %v3368_v6, %v1704_v60  ;;  %vm1712_vm7 = vweird.f32 %v3368_v6 }
 0x924   : > { %v2704_v16 = vpop.eup %2703  ;;  %v1732_v21 = vmul.f32 %v2702_v12, %v1730_v62  ;;  %2705 = vrsqrt.f32 %v3370_v9  ;;  %vm1738_vm9 = vweird.f32 %v2702_v12  ;;  %vm3414_vm11 = vmor %vm1711_vm8, %vm1712_vm7  ;;  %vm1795_vm2 = vweird.f32 %v3370_v9 }
 0x925   : > { %v1707_v23 = vmul.f32 %v3368_v6, %v1706_v13  ;;  %v1761_v24 = vmul.f32 %v2704_v16, %v3353_v0  ;;  %vm1767_vm10 = vweird.f32 %v2704_v16  ;;  %vm1739_vm13 = vmor %vm1737_vm12, %vm1738_vm9  ;;  %v2680_v0 = vld [vmem:[#allocation9] ss:$0 sm:$0xff] }
 0x926   : > { %v1733_v18 = vmul.f32 %v2702_v12, %v1732_v21  ;;  %vm1768_vm15 = vmor %vm1766_vm14, %vm1767_vm10 }
 0x927   : > { %v1708_v27 = vmul.f32 0.5, %v1707_v23  ;;  %v1762_v29 = vmul.f32 %v2704_v16, %v1761_v24 }
 0x928   : > { %v1734_v31 = vmul.f32 0.5, %v1733_v18 }
 0x929   : > { %v1709_v19 = vsub.f32 1.5, %v1708_v27  ;;  %v1763_v32 = vmul.f32 0.5, %v1762_v29 }
 0x92a   : > { %v2706_v33 = vpop.eup %2705  ;;  %v1735_v8 = vsub.f32 1.5, %v1734_v31 }
 0x92b   : > { %v1710_v36 = vmul.f32 %v3368_v6, %v1709_v19  ;;  %v1764_v37 = vsub.f32 1.5, %v1763_v32  ;;  %v1790_v38 = vmul.f32 %v2706_v33, %v3370_v9  ;;  %vm1796_vm0 = vweird.f32 %v2706_v33 }
 0x92c   : > { %v1736_v41 = vmul.f32 %v2702_v12, %v1735_v8  ;;  %vm1797_vm3 = vmor %vm1795_vm2, %vm1796_vm0 }
 0x92d   : > { %v1765_v42 = vmul.f32 %v2704_v16, %v1764_v37  ;;  %v1791_v43 = vmul.f32 %v2706_v33, %v1790_v38  ;;  %v1714_v30 = vsel %vm3414_vm11, %v3368_v6, %v1710_v36 }
 0x92e   : > { %v1740_v44 = vsel %vm1739_vm13, %v2702_v12, %v1736_v41  ;;  %v1715_v49 = vmul.f32 %v1714_v30, %v3308_v14 }
 0x92f   : > { %v1741_v7 = vmul.f32 %v1740_v44, %v3308_v14  ;;  %v1769_v45 = vsel %vm1768_vm15, %v2704_v16, %v1765_v42  ;;  %v1792_v46 = vmul.f32 0.5, %v1791_v43 }
 0x930   : > { %v1770_v50 = vmul.f32 %v1769_v45, %v3308_v14 }
 0x931   : > { %v1743_v47 = vrot.slane %v1741_v7, 1  ;;  %v1793_v48 = vsub.f32 1.5, %v1792_v46 }
 0x932   : > { %v1772_v55 = vrot.slane %v1770_v50, 2 }
 0x933   : > { %v1794_v51 = vmul.f32 %v2706_v33, %v1793_v48  ;;  %v1745_v52 = vadd.f32 %v1743_v47, %v1715_v49 }
 0x935   : > { %v1798_v54 = vsel %vm1797_vm3, %v2706_v33, %v1794_v51  ;;  %v1774_v57 = vadd.f32 %v1772_v55, %v1745_v52 }
 0x936   : > { %v1799_v56 = vmul.f32 %v1798_v54, %v3308_v14 }
 0x938   : > { %v1801_v58 = vrot.slane %v1799_v56, 3 }
 0x93a   : > { %v1803_v60 = vadd.f32 %v1801_v58, %v1774_v57 }
 0x93c   : > { %v1805_v61 = vmul.f32 %v1804_v59, %v1803_v60 }
 0x93e   : > { %v1806_v62 = vperm.slane %v1805_v61, 0 }
 0x940   : > { %v1807_v1 = vmul.f32 %v1806_v62, %v3337_v20  ;;  %v1819_v20 = vld [vmem:[#allocation12] sm:$0x1] }
 0x942   : > { %v1812_v2 = vadd.f32 %v2680_v0, %v1807_v1 }
 0x944   : > { %v1814_v28 = vmin.f32 %v1812_v2, 0.0  ;;  %vm1813_vm4 = vcmp.gt.f32.partialorder %v1812_v2, 0.0 }
 0x946   : > { %v1815_v3 = vmul.f32 1.442695, %v1814_v28 }
 0x948   : > { %2707 = vpow2.f32 %v1815_v3 }
 0x94e   : > { %v2708_v4 = vpop.eup %2707 }
 0x94f   : > { %v2409_v5 = vadd.f32 -1.0, %v2708_v4 }
 0x951   : > { %v1818_v6 = vsel %vm1813_vm4, %v1812_v2, %v2409_v5 }
 0x952   : > { %v1820_v9 = vpack.c.bf16 %v1818_v6, %v1818_v6 }
 0x954   : > { %2426 = vmatmul.msk.bf16.vlgmr.msrb.gmra.mxu0 %vm695_vm1, %v1820_v9  ;;  %v1879_v14 = vshrl.u32 %v1820_v9, 16  ;;  %v1932_v10 = vrot.slane %v1820_v9, 1 }
 0x956   : > { %2451 = vmatmul.msk.bf16.vlgmr.msrb.gmra.mxu1 %vm695_vm1, %v1879_v14  ;;  %2476 = vmatmul.msk.bf16.vlgmr.msrb.gmra.mxu2 %vm695_vm1, %v1932_v10  ;;  %v1983_v11 = vrot.slane %v1879_v14, 1 }
 0x958   : > { %2501 = vmatmul.msk.bf16.vlgmr.msrb.gmra.mxu3 %vm695_vm1, %v1983_v11 }
 0x9d1   : > { %v1865_v12 = vpop.f32.mrf.mxu0 }
 0x9d2   : > { %v1869_v63 = vadd.f32 %v1865_v12, %v1819_v20 }
 0x9d3   : > { %v1917_v13 = vpop.f32.mrf.mxu1 }
 0x9d4   : > { %v1921_v15 = vadd.f32 %v1917_v13, %v1869_v63 }
 0x9d9   : > { %v1867_v16 = vpop.f32.mrf.mxu0  ;;  %v1969_v21 = vpop.f32.mrf.mxu2 }
 0x9da   : > { %v1973_v23 = vadd.f32 %v1969_v21, %v1921_v15 }
 0x9db   : > { %v1919_v24 = vpop.f32.mrf.mxu1  ;;  %v2020_v18 = vpop.f32.mrf.mxu3 }
 0x9dc   : > { %v2024_v25 = vadd.f32 %v2020_v18, %v1973_v23 }
 0x9de   : > { %2026 = vst.msk [vmem:[%s688_s11] sm:$0x1] %vm2025_vm5, %v2024_v25 }
 0x9e1   : > { %v1971_v26 = vpop.f32.mrf.mxu2 }
 0x9e3   : > { %v2022_v27 = vpop.f32.mrf.mxu3 }
 0x9e4 PF: > { %s33_s28 = sadd.s32 1, %s2911_s28  }
 0x9e5   : > { %p30_p7 = scmp.ge.s32.totalorder %s33_s28, 4  }
 0x9e7   :  { %32 = sbr.rel (!%p30_p7) target bundleno = 12 (0xc), region = 166 }
 0x9ec   :  { %2044 = vsyncpa [#allocation5], 1 }
 0x9ed   :  { %2046 = vsyncpa [#allocation5 + $0x1], 1 }
 0x9ee   :  { %2047 = vsyncpa [#allocation7], 1 }
 0x9ef   :  { %2048 = vsyncpa [#allocation10], 1 }
 0x9f0   :  { %2049 = vsyncpa [#allocation13], 1 }

</bundles_post_ra>
